<compile_context>
chip_gen: v6e
topology: v6e:2x2x1
jax: 0.10.0
libtpu: 0.0.40
codegen_flags: <defaults>
</compile_context>

<pallas_src>
import jax
import jax.numpy as jnp
from jax import lax
from jax.experimental import pallas as pl
from jax.experimental.pallas import tpu as pltpu

# ---------------- small Llama-ish config ----------------
BATCH = 2
SEQ = 8
HIDDEN = 32
N_HEADS = 4
HEAD_DIM = HIDDEN // N_HEADS
INTERMEDIATE = 64
VOCAB = 64
N_LAYERS = 2
RMS_EPS = 1e-6
ROPE_THETA = 10000.0
MASK_VALUE = -1e30

# DistributedModel.runtime_config.workers: (start, end) layer offsets per pipeline stage.
# Stage 0 owns embeddings + rotary tables, the last stage owns the final norm.
STAGE_OFFSETS = [(0, 1), (1, N_LAYERS)]

# TODO(synk): torch.distributed.rpc / RRef transport, checkpoint loading and
# DynamicCache (use_cache) have no Pallas equivalent; layers run sequentially on one
# device with in-script weights and no KV cache (single prefill pass).


# ---------------- fused Pallas kernel ----------------
def fused_llama_kernel(h0_ref, cos_ref, sin_ref, rot_ref, mask_ref,
                       ln1_ref, wqkv_ref, wo_ref, ln2_ref, wgu_ref, wd_ref,
                       fnorm_ref, out_ref, h_acc):
    """Grid = (batch, layer). One LlamaDecoderLayer per (b, l) step:
    RMSNorm -> fused-QKV attention (RoPE, causal softmax) -> residual ->
    RMSNorm -> fused SwiGLU MLP -> residual. Final RMSNorm fused into last layer."""
    layer = pl.program_id(1)
    n_layers = pl.num_programs(1)

    H = HIDDEN
    D = HEAD_DIM
    NH = N_HEADS
    I = INTERMEDIATE

    # Layer 0: load the embedded hidden state into the resident VMEM accumulator.
    @pl.when(layer == 0)
    def _():
        h_acc[...] = h0_ref[...]

    x = h_acc[...]                                           # (1, S, H) f32
    Bb, S, _ = x.shape

    # ---- input_layernorm (RMSNorm, f32) ----
    var = jnp.mean(x * x, axis=-1, keepdims=True)
    xn = x * lax.rsqrt(var + RMS_EPS) * ln1_ref[...]

    # ---- fused QKV projection: one (S, H) @ (H, 3H) MXU op ----
    xn2d = xn.reshape(Bb * S, H).astype(jnp.bfloat16)
    qkv = jnp.dot(xn2d, wqkv_ref[0], preferred_element_type=jnp.float32)   # (S, 3H)
    qk = qkv[:, :2 * H]                                      # q || k, all heads
    v3 = qkv[:, 2 * H:].reshape(Bb, S, H)

    # ---- RoPE for q and k of all heads: rotate_half == one block-diag matmul ----
    qk_rot = jnp.dot(qk.astype(jnp.bfloat16), rot_ref[...],
                     preferred_element_type=jnp.float32)
    qk_roped = (qk.reshape(Bb, S, 2 * H) * cos_ref[...]
                + qk_rot.reshape(Bb, S, 2 * H) * sin_ref[...])
    q3 = qk_roped[:, :, :H]
    k3 = qk_roped[:, :, H:]

    mask = mask_ref[...][None, :, :]                         # (1, S, S) additive
    scale = 1.0 / (D ** 0.5)

    # ---- attention: heads are independent; outputs concatenated into one lane-dense
    #      (S, H) slab feeding a single o_proj matmul (no serial accumulation).
    # TODO(synk): a fully head-batched (B*NH, S, D) einsum needs a sublane transpose
    # that Mosaic dot_general does not lower robustly at these tiny shapes; heads are
    # statically unrolled instead (independent iterations, no dependency chain).
    head_outs = []
    for hh in range(NH):
        s0 = hh * D
        qh = q3[:, :, s0:s0 + D].astype(jnp.bfloat16)
        kh = k3[:, :, s0:s0 + D].astype(jnp.bfloat16)
        vh = v3[:, :, s0:s0 + D].astype(jnp.bfloat16)
        sc = jnp.einsum('bqd,bkd->bqk', qh, kh,
                        preferred_element_type=jnp.float32) * scale + mask
        m = jnp.max(sc, axis=-1, keepdims=True)
        p = jnp.exp(sc - m)
        denom = jnp.sum(p, axis=-1, keepdims=True)
        p = p * pl.reciprocal(denom, approx=True)            # EUP, off the VPU path
        head_outs.append(jnp.einsum('bqk,bkd->bqd', p.astype(jnp.bfloat16), vh,
                                    preferred_element_type=jnp.float32))
    attn = jnp.concatenate(head_outs, axis=-1)               # (1, S, H)
    attn_proj = jnp.dot(attn.reshape(Bb * S, H).astype(jnp.bfloat16), wo_ref[0],
                        preferred_element_type=jnp.float32).reshape(Bb, S, H)
    h1 = x + attn_proj                                       # residual 1

    # ---- post_attention_layernorm + fused SwiGLU MLP ----
    var2 = jnp.mean(h1 * h1, axis=-1, keepdims=True)
    xn2 = h1 * lax.rsqrt(var2 + RMS_EPS) * ln2_ref[...]
    gu = jnp.dot(xn2.reshape(Bb * S, H).astype(jnp.bfloat16), wgu_ref[0],
                 preferred_element_type=jnp.float32)         # (S, 2I), 128-lane output
    g = gu[:, :I]
    u = gu[:, I:]
    act = (g * jax.nn.sigmoid(g)) * u                        # SiLU(gate) * up, f32
    mlp = jnp.dot(act.astype(jnp.bfloat16), wd_ref[0],
                  preferred_element_type=jnp.float32).reshape(Bb, S, H)
    h2 = h1 + mlp                                            # residual 2

    h_acc[...] = h2                                          # stays resident in VMEM

    # Last pipeline stage's final RMSNorm, fused into the last layer step.
    @pl.when(layer == n_layers - 1)
    def _():
        varf = jnp.mean(h2 * h2, axis=-1, keepdims=True)
        out_ref[...] = h2 * lax.rsqrt(varf + RMS_EPS) * fnorm_ref[...]


# ---------------- host-side precomputed tables ----------------
def rope_tables(seq_len):
    """cos/sin tiled to width 2H so one elementwise pass ropes q||k of all heads."""
    inv_freq = 1.0 / (ROPE_THETA ** (
        jnp.arange(0, HEAD_DIM, 2, dtype=jnp.float32) / HEAD_DIM))
    pos = jnp.arange(seq_len, dtype=jnp.float32)             # cache_position
    freqs = jnp.outer(pos, inv_freq)                         # (S, D/2)
    emb = jnp.concatenate([freqs, freqs], axis=-1)           # (S, D)
    cos = jnp.tile(jnp.cos(emb), (1, 2 * N_HEADS))[None]     # (1, S, 2H)
    sin = jnp.tile(jnp.sin(emb), (1, 2 * N_HEADS))[None]
    return cos, sin


def rotate_half_block_matrix():
    """(2H, 2H) block-diagonal M with x_head @ M_block == rotate_half(x_head)."""
    half = HEAD_DIM // 2
    m = jnp.zeros((HEAD_DIM, HEAD_DIM), jnp.float32)
    idx = jnp.arange(half)
    m = m.at[idx + half, idx].set(-1.0)
    m = m.at[idx, idx + half].set(1.0)
    return jnp.kron(jnp.eye(2 * N_HEADS, dtype=jnp.float32), m).astype(jnp.bfloat16)


def causal_mask(seq_len):
    row = lax.broadcasted_iota(jnp.int32, (seq_len, seq_len), 0)
    col = lax.broadcasted_iota(jnp.int32, (seq_len, seq_len), 1)
    return jnp.where(col <= row, 0.0, MASK_VALUE).astype(jnp.float32)


# ---------------- params & forward wrapper ----------------
def init_params(key):
    def nrm(k, shape, scale=0.02):
        return scale * jax.random.normal(k, shape, dtype=jnp.float32)

    ks = jax.random.split(key, 6)
    params = {
        'embed': nrm(ks[0], (VOCAB, HIDDEN)),
        # per-layer weights stacked along a leading layer axis; matmul weights stored
        # bf16 in [in, out] layout (kernel computes x @ W == nn.Linear with W = weight.T)
        'ln1': jnp.ones((N_LAYERS, 1, HIDDEN), jnp.float32),
        'ln2': jnp.ones((N_LAYERS, 1, HIDDEN), jnp.float32),
        'wqkv': nrm(ks[1], (N_LAYERS, HIDDEN, 3 * HIDDEN)).astype(jnp.bfloat16),
        'wo':   nrm(ks[2], (N_LAYERS, HIDDEN, HIDDEN)).astype(jnp.bfloat16),
        'wgu':  nrm(ks[3], (N_LAYERS, HIDDEN, 2 * INTERMEDIATE)).astype(jnp.bfloat16),
        'wd':   nrm(ks[4], (N_LAYERS, INTERMEDIATE, HIDDEN)).astype(jnp.bfloat16),
        'final_norm': jnp.ones((1, 1, HIDDEN), jnp.float32),
    }
    return params, ks[5]


def distributed_llama_forward(params, input_ids):
    """DistributedModel.forward: stage 0 embeds + builds rotary tables, every stage runs
    its layer range (== the sequential layer grid axis), the last stage's final norm is
    fused into the last grid step."""
    B, S = input_ids.shape
    assert STAGE_OFFSETS[0][0] == 0 and STAGE_OFFSETS[-1][1] == N_LAYERS

    cos, sin = rope_tables(S)
    rot = rotate_half_block_matrix()
    mask = causal_mask(S)
    # TODO(synk): embedding gather (data-dependent) stays in plain JAX outside the kernel.
    h0 = params['embed'][input_ids].astype(jnp.float32)      # (B, S, H)

    per_b = lambda b, l: (b, 0, 0)
    per_l = lambda b, l: (l, 0, 0)
    const3 = lambda b, l: (0, 0, 0)
    const2 = lambda b, l: (0, 0)

    grid_spec = pltpu.PrefetchScalarGridSpec(
        num_scalar_prefetch=0,
        grid=(B, N_LAYERS),                                  # layers innermost
        in_specs=[
            pl.BlockSpec((1, S, HIDDEN), per_b),             # embedded tokens
            pl.BlockSpec((1, S, 2 * HIDDEN), const3),        # cos (resident)
            pl.BlockSpec((1, S, 2 * HIDDEN), const3),        # sin (resident)
            pl.BlockSpec((2 * HIDDEN, 2 * HIDDEN), const2),  # rotate_half block-diag
            pl.BlockSpec((S, S), const2),                    # causal mask (resident)
            pl.BlockSpec((1, 1, HIDDEN), per_l),             # input_layernorm
            pl.BlockSpec((1, HIDDEN, 3 * HIDDEN), per_l),    # fused Wq||Wk||Wv
            pl.BlockSpec((1, HIDDEN, HIDDEN), per_l),        # Wo
            pl.BlockSpec((1, 1, HIDDEN), per_l),             # post_attention_layernorm
            pl.BlockSpec((1, HIDDEN, 2 * INTERMEDIATE), per_l),  # fused Wgate||Wup
            pl.BlockSpec((1, INTERMEDIATE, HIDDEN), per_l),  # Wdown
            pl.BlockSpec((1, 1, HIDDEN), const3),            # final norm weight
        ],
        out_specs=pl.BlockSpec((1, S, HIDDEN), per_b),
        scratch_shapes=[pltpu.VMEM((1, S, HIDDEN), jnp.float32)],   # resident hidden state
    )
    return pl.pallas_call(
        fused_llama_kernel,
        out_shape=jax.ShapeDtypeStruct((B, S, HIDDEN), jnp.float32),
        grid_spec=grid_spec,
        compiler_params=pltpu.CompilerParams(
            # batch axis shards across TensorCores (v7x); layer axis carries the
            # resident hidden state so it must stay sequential.
            dimension_semantics=("parallel", "arbitrary")),
    )(h0, cos, sin, rot, mask,
      params['ln1'], params['wqkv'], params['wo'],
      params['ln2'], params['wgu'], params['wd'], params['final_norm'])


if __name__ == "__main__":
    key = jax.random.PRNGKey(0)
    params, key = init_params(key)
    key, ik = jax.random.split(key)
    input_ids = jax.random.randint(ik, (BATCH, SEQ), 0, VOCAB, dtype=jnp.int32)

    out = distributed_llama_forward(params, input_ids)
    out = jax.block_until_ready(out)

    assert out.shape == (BATCH, SEQ, HIDDEN), out.shape
    assert bool(jnp.all(jnp.isfinite(out)))
    print("KERNEL_OK")
</pallas_src>

<mosaic_0001>
module attributes {stable_mosaic.version = 11 : i64} {
  func.func @fused_llama_kernel(%arg0: i32, %arg1: i32, %arg2: memref<1x8x32xf32, #tpu.memory_space<vmem>>, %arg3: memref<1x8x64xf32, #tpu.memory_space<vmem>>, %arg4: memref<1x8x64xf32, #tpu.memory_space<vmem>>, %arg5: memref<64x64xbf16, #tpu.memory_space<vmem>>, %arg6: memref<8x8xf32, #tpu.memory_space<vmem>>, %arg7: memref<1x1x32xf32, #tpu.memory_space<vmem>>, %arg8: memref<1x32x96xbf16, #tpu.memory_space<vmem>>, %arg9: memref<1x32x32xbf16, #tpu.memory_space<vmem>>, %arg10: memref<1x1x32xf32, #tpu.memory_space<vmem>>, %arg11: memref<1x32x128xbf16, #tpu.memory_space<vmem>>, %arg12: memref<1x64x32xbf16, #tpu.memory_space<vmem>>, %arg13: memref<1x1x32xf32, #tpu.memory_space<vmem>>, %arg14: memref<1x8x32xf32, #tpu.memory_space<vmem>>, %arg15: memref<1x8x32xf32, #tpu.memory_space<vmem>>) attributes {dimension_semantics = [#tpu.dimension_semantics<parallel>, #tpu.dimension_semantics<arbitrary>], iteration_bounds = array<i64: 2, 2>, scalar_prefetch = 0 : i64, scratch_operands = 1 : i64, tpu.core_type = #tpu.core_type<tc>, window_params = [{transform_indices = @transform_0, window_bounds = array<i64: 1, 8, 32>}, {pipeline_mode = #tpu.pipeline_mode<synchronous>, transform_indices = @transform_1, window_bounds = array<i64: 1, 8, 64>}, {pipeline_mode = #tpu.pipeline_mode<synchronous>, transform_indices = @transform_2, window_bounds = array<i64: 1, 8, 64>}, {pipeline_mode = #tpu.pipeline_mode<synchronous>, transform_indices = @transform_3, window_bounds = array<i64: 64, 64>}, {pipeline_mode = #tpu.pipeline_mode<synchronous>, transform_indices = @transform_4, window_bounds = array<i64: 8, 8>}, {transform_indices = @transform_5, window_bounds = array<i64: 1, 1, 32>}, {transform_indices = @transform_6, window_bounds = array<i64: 1, 32, 96>}, {transform_indices = @transform_7, window_bounds = array<i64: 1, 32, 32>}, {transform_indices = @transform_8, window_bounds = array<i64: 1, 1, 32>}, {transform_indices = @transform_9, window_bounds = array<i64: 1, 32, 128>}, {transform_indices = @transform_10, window_bounds = array<i64: 1, 64, 32>}, {pipeline_mode = #tpu.pipeline_mode<synchronous>, transform_indices = @transform_11, window_bounds = array<i64: 1, 1, 32>}, {transform_indices = @transform_12, window_bounds = array<i64: 1, 8, 32>}]} {
    %c0_i32 = arith.constant 0 : i32
    %0 = arith.cmpi eq, %arg1, %c0_i32 : i32
    %1 = arith.extui %0 : i1 to i32
    %c0_i32_0 = arith.constant 0 : i32
    %2 = arith.cmpi ne, %1, %c0_i32_0 : i32
    scf.if %2 {
      %c0_66 = arith.constant 0 : index
      %c0_67 = arith.constant 0 : index
      %c0_68 = arith.constant 0 : index
      %172 = vector.load %arg2[%c0_66, %c0_67, %c0_68] : memref<1x8x32xf32, #tpu.memory_space<vmem>>, vector<1x8x32xf32>
      %c0_69 = arith.constant 0 : index
      %c0_70 = arith.constant 0 : index
      %c0_71 = arith.constant 0 : index
      %173 = vector.load %arg15[%c0_69, %c0_70, %c0_71] : memref<1x8x32xf32, #tpu.memory_space<vmem>>, vector<1x8x32xf32>
      tpu.vector_store %arg15[%c0_69, %c0_70, %c0_71], %172 {strides = array<i32>} : memref<1x8x32xf32, #tpu.memory_space<vmem>>, vector<1x8x32xf32>,
    } else {
    }
    %c0 = arith.constant 0 : index
    %c0_1 = arith.constant 0 : index
    %c0_2 = arith.constant 0 : index
    %3 = vector.load %arg15[%c0, %c0_1, %c0_2] : memref<1x8x32xf32, #tpu.memory_space<vmem>>, vector<1x8x32xf32>
    %4 = arith.mulf %3, %3 : vector<1x8x32xf32>
    %cst = arith.constant dense<0.000000e+00> : vector<1x8xf32>
    %5 = vector.multi_reduction <add>, %4, %cst [2] : vector<1x8x32xf32> to vector<1x8xf32>
    %6 = vector.shape_cast %5 : vector<1x8xf32> to vector<1x8x1xf32>
    %cst_3 = arith.constant 3.200000e+01 : f32
    %7 = vector.broadcast %cst_3 : f32 to vector<1x8x1xf32>
    %8 = arith.divf %6, %7 : vector<1x8x1xf32>
    %cst_4 = arith.constant 9.99999997E-7 : f32
    %9 = vector.broadcast %cst_4 : f32 to vector<1x8x1xf32>
    %10 = arith.addf %8, %9 : vector<1x8x1xf32>
    %11 = math.rsqrt %10 : vector<1x8x1xf32>
    %12 = vector.broadcast %11 : vector<1x8x1xf32> to vector<1x8x32xf32>
    %13 = arith.mulf %3, %12 : vector<1x8x32xf32>
    %c0_5 = arith.constant 0 : index
    %c0_6 = arith.constant 0 : index
    %c0_7 = arith.constant 0 : index
    %14 = vector.load %arg7[%c0_5, %c0_6, %c0_7] : memref<1x1x32xf32, #tpu.memory_space<vmem>>, vector<1x1x32xf32>
    %15 = vector.broadcast %14 : vector<1x1x32xf32> to vector<1x8x32xf32>
    %16 = arith.mulf %13, %15 : vector<1x8x32xf32>
    %17 = vector.shape_cast %16 : vector<1x8x32xf32> to vector<8x32xf32>
    %18 = arith.truncf %17 : vector<8x32xf32> to vector<8x32xbf16>
    %c0_8 = arith.constant 0 : index
    %c0_9 = arith.constant 0 : index
    %c0_10 = arith.constant 0 : index
    %19 = vector.load %arg8[%c0_8, %c0_9, %c0_10] : memref<1x32x96xbf16, #tpu.memory_space<vmem>>, vector<1x32x96xbf16>
    %20 = vector.shape_cast %19 : vector<1x32x96xbf16> to vector<32x96xbf16>
    %cst_11 = arith.constant dense<0.000000e+00> : vector<8x96xf32>
    %21 = tpu.matmul %18, %20, %cst_11 {dimension_numbers = #tpu.dot_dimension_numbers<[1], [0], [0], [1], [0, 0, 1, 1], [], []>} : vector<8x32xbf16>, vector<32x96xbf16>, vector<8x96xf32> -> vector<8x96xf32>
    %22 = vector.extract_strided_slice %21 {offsets = [0, 0], sizes = [8, 64], strides = [1, 1]} : vector<8x96xf32> to vector<8x64xf32>
    %23 = vector.extract_strided_slice %21 {offsets = [0, 64], sizes = [8, 32], strides = [1, 1]} : vector<8x96xf32> to vector<8x32xf32>
    %24 = vector.shape_cast %23 : vector<8x32xf32> to vector<1x8x32xf32>
    %25 = arith.truncf %22 : vector<8x64xf32> to vector<8x64xbf16>
    %c0_12 = arith.constant 0 : index
    %c0_13 = arith.constant 0 : index
    %26 = vector.load %arg5[%c0_12, %c0_13] : memref<64x64xbf16, #tpu.memory_space<vmem>>, vector<64x64xbf16>
    %cst_14 = arith.constant dense<0.000000e+00> : vector<8x64xf32>
    %27 = tpu.matmul %25, %26, %cst_14 {dimension_numbers = #tpu.dot_dimension_numbers<[1], [0], [0], [1], [0, 0, 1, 1], [], []>} : vector<8x64xbf16>, vector<64x64xbf16>, vector<8x64xf32> -> vector<8x64xf32>
    %28 = vector.shape_cast %22 : vector<8x64xf32> to vector<1x8x64xf32>
    %c0_15 = arith.constant 0 : index
    %c0_16 = arith.constant 0 : index
    %c0_17 = arith.constant 0 : index
    %29 = vector.load %arg3[%c0_15, %c0_16, %c0_17] : memref<1x8x64xf32, #tpu.memory_space<vmem>>, vector<1x8x64xf32>
    %30 = arith.mulf %28, %29 : vector<1x8x64xf32>
    %31 = vector.shape_cast %27 : vector<8x64xf32> to vector<1x8x64xf32>
    %c0_18 = arith.constant 0 : index
    %c0_19 = arith.constant 0 : index
    %c0_20 = arith.constant 0 : index
    %32 = vector.load %arg4[%c0_18, %c0_19, %c0_20] : memref<1x8x64xf32, #tpu.memory_space<vmem>>, vector<1x8x64xf32>
    %33 = arith.mulf %31, %32 : vector<1x8x64xf32>
    %34 = arith.addf %30, %33 : vector<1x8x64xf32>
    %35 = vector.extract_strided_slice %34 {offsets = [0, 0, 0], sizes = [1, 8, 32], strides = [1, 1, 1]} : vector<1x8x64xf32> to vector<1x8x32xf32>
    %36 = vector.extract_strided_slice %34 {offsets = [0, 0, 32], sizes = [1, 8, 32], strides = [1, 1, 1]} : vector<1x8x64xf32> to vector<1x8x32xf32>
    %c0_21 = arith.constant 0 : index
    %c0_22 = arith.constant 0 : index
    %37 = vector.load %arg6[%c0_21, %c0_22] : memref<8x8xf32, #tpu.memory_space<vmem>>, vector<8x8xf32>
    %38 = vector.shape_cast %37 : vector<8x8xf32> to vector<1x8x8xf32>
    %39 = vector.extract_strided_slice %35 {offsets = [0, 0, 0], sizes = [1, 8, 8], strides = [1, 1, 1]} : vector<1x8x32xf32> to vector<1x8x8xf32>
    %40 = arith.truncf %39 : vector<1x8x8xf32> to vector<1x8x8xbf16>
    %41 = vector.extract_strided_slice %36 {offsets = [0, 0, 0], sizes = [1, 8, 8], strides = [1, 1, 1]} : vector<1x8x32xf32> to vector<1x8x8xf32>
    %42 = arith.truncf %41 : vector<1x8x8xf32> to vector<1x8x8xbf16>
    %43 = vector.extract_strided_slice %24 {offsets = [0, 0, 0], sizes = [1, 8, 8], strides = [1, 1, 1]} : vector<1x8x32xf32> to vector<1x8x8xf32>
    %44 = arith.truncf %43 : vector<1x8x8xf32> to vector<1x8x8xbf16>
    "tpu.trace_start"() <{level = 10 : i32, message = "bqd,bkd->bqk"}> : () -> ()
    %cst_23 = arith.constant dense<0.000000e+00> : vector<1x8x8xf32>
    %45 = tpu.matmul %40, %42, %cst_23 {dimension_numbers = #tpu.dot_dimension_numbers<[2], [2], [1], [1], [0, 0, 0, 1, 1, 1], [0], [0]>} : vector<1x8x8xbf16>, vector<1x8x8xbf16>, vector<1x8x8xf32> -> vector<1x8x8xf32>
    "tpu.trace_stop"() : () -> ()
    %cst_24 = arith.constant 0.353553385 : f32
    %46 = vector.broadcast %cst_24 : f32 to vector<1x8x8xf32>
    %47 = arith.mulf %45, %46 : vector<1x8x8xf32>
    %48 = arith.addf %47, %38 : vector<1x8x8xf32>
    %cst_25 = arith.constant dense<0xFF800000> : vector<1x8xf32>
    %49 = vector.multi_reduction <maximumf>, %48, %cst_25 [2] : vector<1x8x8xf32> to vector<1x8xf32>
    %50 = vector.shape_cast %49 : vector<1x8xf32> to vector<1x8x1xf32>
    %51 = vector.broadcast %50 : vector<1x8x1xf32> to vector<1x8x8xf32>
    %52 = arith.subf %48, %51 : vector<1x8x8xf32>
    %53 = math.exp %52 : vector<1x8x8xf32>
    %cst_26 = arith.constant dense<0.000000e+00> : vector<1x8xf32>
    %54 = vector.multi_reduction <add>, %53, %cst_26 [2] : vector<1x8x8xf32> to vector<1x8xf32>
    %55 = vector.shape_cast %54 : vector<1x8xf32> to vector<1x8x1xf32>
    %56 = tpu.reciprocal %55 {approx = true} : vector<1x8x1xf32> -> vector<1x8x1xf32>
    %57 = vector.broadcast %56 : vector<1x8x1xf32> to vector<1x8x8xf32>
    %58 = arith.mulf %53, %57 : vector<1x8x8xf32>
    %59 = arith.truncf %58 : vector<1x8x8xf32> to vector<1x8x8xbf16>
    "tpu.trace_start"() <{level = 10 : i32, message = "bqk,bkd->bqd"}> : () -> ()
    %cst_27 = arith.constant dense<0.000000e+00> : vector<1x8x8xf32>
    %60 = tpu.matmul %59, %44, %cst_27 {dimension_numbers = #tpu.dot_dimension_numbers<[2], [1], [1], [2], [0, 0, 0, 1, 1, 2], [0], [0]>} : vector<1x8x8xbf16>, vector<1x8x8xbf16>, vector<1x8x8xf32> -> vector<1x8x8xf32>
    "tpu.trace_stop"() : () -> ()
    %61 = vector.extract_strided_slice %35 {offsets = [0, 0, 8], sizes = [1, 8, 8], strides = [1, 1, 1]} : vector<1x8x32xf32> to vector<1x8x8xf32>
    %62 = arith.truncf %61 : vector<1x8x8xf32> to vector<1x8x8xbf16>
    %63 = vector.extract_strided_slice %36 {offsets = [0, 0, 8], sizes = [1, 8, 8], strides = [1, 1, 1]} : vector<1x8x32xf32> to vector<1x8x8xf32>
    %64 = arith.truncf %63 : vector<1x8x8xf32> to vector<1x8x8xbf16>
    %65 = vector.extract_strided_slice %24 {offsets = [0, 0, 8], sizes = [1, 8, 8], strides = [1, 1, 1]} : vector<1x8x32xf32> to vector<1x8x8xf32>
    %66 = arith.truncf %65 : vector<1x8x8xf32> to vector<1x8x8xbf16>
    "tpu.trace_start"() <{level = 10 : i32, message = "bqd,bkd->bqk"}> : () -> ()
    %cst_28 = arith.constant dense<0.000000e+00> : vector<1x8x8xf32>
    %67 = tpu.matmul %62, %64, %cst_28 {dimension_numbers = #tpu.dot_dimension_numbers<[2], [2], [1], [1], [0, 0, 0, 1, 1, 1], [0], [0]>} : vector<1x8x8xbf16>, vector<1x8x8xbf16>, vector<1x8x8xf32> -> vector<1x8x8xf32>
    "tpu.trace_stop"() : () -> ()
    %cst_29 = arith.constant 0.353553385 : f32
    %68 = vector.broadcast %cst_29 : f32 to vector<1x8x8xf32>
    %69 = arith.mulf %67, %68 : vector<1x8x8xf32>
    %70 = arith.addf %69, %38 : vector<1x8x8xf32>
    %cst_30 = arith.constant dense<0xFF800000> : vector<1x8xf32>
    %71 = vector.multi_reduction <maximumf>, %70, %cst_30 [2] : vector<1x8x8xf32> to vector<1x8xf32>
    %72 = vector.shape_cast %71 : vector<1x8xf32> to vector<1x8x1xf32>
    %73 = vector.broadcast %72 : vector<1x8x1xf32> to vector<1x8x8xf32>
    %74 = arith.subf %70, %73 : vector<1x8x8xf32>
    %75 = math.exp %74 : vector<1x8x8xf32>
    %cst_31 = arith.constant dense<0.000000e+00> : vector<1x8xf32>
    %76 = vector.multi_reduction <add>, %75, %cst_31 [2] : vector<1x8x8xf32> to vector<1x8xf32>
    %77 = vector.shape_cast %76 : vector<1x8xf32> to vector<1x8x1xf32>
    %78 = tpu.reciprocal %77 {approx = true} : vector<1x8x1xf32> -> vector<1x8x1xf32>
    %79 = vector.broadcast %78 : vector<1x8x1xf32> to vector<1x8x8xf32>
    %80 = arith.mulf %75, %79 : vector<1x8x8xf32>
    %81 = arith.truncf %80 : vector<1x8x8xf32> to vector<1x8x8xbf16>
    "tpu.trace_start"() <{level = 10 : i32, message = "bqk,bkd->bqd"}> : () -> ()
    %cst_32 = arith.constant dense<0.000000e+00> : vector<1x8x8xf32>
    %82 = tpu.matmul %81, %66, %cst_32 {dimension_numbers = #tpu.dot_dimension_numbers<[2], [1], [1], [2], [0, 0, 0, 1, 1, 2], [0], [0]>} : vector<1x8x8xbf16>, vector<1x8x8xbf16>, vector<1x8x8xf32> -> vector<1x8x8xf32>
    "tpu.trace_stop"() : () -> ()
    %83 = vector.extract_strided_slice %35 {offsets = [0, 0, 16], sizes = [1, 8, 8], strides = [1, 1, 1]} : vector<1x8x32xf32> to vector<1x8x8xf32>
    %84 = arith.truncf %83 : vector<1x8x8xf32> to vector<1x8x8xbf16>
    %85 = vector.extract_strided_slice %36 {offsets = [0, 0, 16], sizes = [1, 8, 8], strides = [1, 1, 1]} : vector<1x8x32xf32> to vector<1x8x8xf32>
    %86 = arith.truncf %85 : vector<1x8x8xf32> to vector<1x8x8xbf16>
    %87 = vector.extract_strided_slice %24 {offsets = [0, 0, 16], sizes = [1, 8, 8], strides = [1, 1, 1]} : vector<1x8x32xf32> to vector<1x8x8xf32>
    %88 = arith.truncf %87 : vector<1x8x8xf32> to vector<1x8x8xbf16>
    "tpu.trace_start"() <{level = 10 : i32, message = "bqd,bkd->bqk"}> : () -> ()
    %cst_33 = arith.constant dense<0.000000e+00> : vector<1x8x8xf32>
    %89 = tpu.matmul %84, %86, %cst_33 {dimension_numbers = #tpu.dot_dimension_numbers<[2], [2], [1], [1], [0, 0, 0, 1, 1, 1], [0], [0]>} : vector<1x8x8xbf16>, vector<1x8x8xbf16>, vector<1x8x8xf32> -> vector<1x8x8xf32>
    "tpu.trace_stop"() : () -> ()
    %cst_34 = arith.constant 0.353553385 : f32
    %90 = vector.broadcast %cst_34 : f32 to vector<1x8x8xf32>
    %91 = arith.mulf %89, %90 : vector<1x8x8xf32>
    %92 = arith.addf %91, %38 : vector<1x8x8xf32>
    %cst_35 = arith.constant dense<0xFF800000> : vector<1x8xf32>
    %93 = vector.multi_reduction <maximumf>, %92, %cst_35 [2] : vector<1x8x8xf32> to vector<1x8xf32>
    %94 = vector.shape_cast %93 : vector<1x8xf32> to vector<1x8x1xf32>
    %95 = vector.broadcast %94 : vector<1x8x1xf32> to vector<1x8x8xf32>
    %96 = arith.subf %92, %95 : vector<1x8x8xf32>
    %97 = math.exp %96 : vector<1x8x8xf32>
    %cst_36 = arith.constant dense<0.000000e+00> : vector<1x8xf32>
    %98 = vector.multi_reduction <add>, %97, %cst_36 [2] : vector<1x8x8xf32> to vector<1x8xf32>
    %99 = vector.shape_cast %98 : vector<1x8xf32> to vector<1x8x1xf32>
    %100 = tpu.reciprocal %99 {approx = true} : vector<1x8x1xf32> -> vector<1x8x1xf32>
    %101 = vector.broadcast %100 : vector<1x8x1xf32> to vector<1x8x8xf32>
    %102 = arith.mulf %97, %101 : vector<1x8x8xf32>
    %103 = arith.truncf %102 : vector<1x8x8xf32> to vector<1x8x8xbf16>
    "tpu.trace_start"() <{level = 10 : i32, message = "bqk,bkd->bqd"}> : () -> ()
    %cst_37 = arith.constant dense<0.000000e+00> : vector<1x8x8xf32>
    %104 = tpu.matmul %103, %88, %cst_37 {dimension_numbers = #tpu.dot_dimension_numbers<[2], [1], [1], [2], [0, 0, 0, 1, 1, 2], [0], [0]>} : vector<1x8x8xbf16>, vector<1x8x8xbf16>, vector<1x8x8xf32> -> vector<1x8x8xf32>
    "tpu.trace_stop"() : () -> ()
    %105 = vector.extract_strided_slice %35 {offsets = [0, 0, 24], sizes = [1, 8, 8], strides = [1, 1, 1]} : vector<1x8x32xf32> to vector<1x8x8xf32>
    %106 = arith.truncf %105 : vector<1x8x8xf32> to vector<1x8x8xbf16>
    %107 = vector.extract_strided_slice %36 {offsets = [0, 0, 24], sizes = [1, 8, 8], strides = [1, 1, 1]} : vector<1x8x32xf32> to vector<1x8x8xf32>
    %108 = arith.truncf %107 : vector<1x8x8xf32> to vector<1x8x8xbf16>
    %109 = vector.extract_strided_slice %24 {offsets = [0, 0, 24], sizes = [1, 8, 8], strides = [1, 1, 1]} : vector<1x8x32xf32> to vector<1x8x8xf32>
    %110 = arith.truncf %109 : vector<1x8x8xf32> to vector<1x8x8xbf16>
    "tpu.trace_start"() <{level = 10 : i32, message = "bqd,bkd->bqk"}> : () -> ()
    %cst_38 = arith.constant dense<0.000000e+00> : vector<1x8x8xf32>
    %111 = tpu.matmul %106, %108, %cst_38 {dimension_numbers = #tpu.dot_dimension_numbers<[2], [2], [1], [1], [0, 0, 0, 1, 1, 1], [0], [0]>} : vector<1x8x8xbf16>, vector<1x8x8xbf16>, vector<1x8x8xf32> -> vector<1x8x8xf32>
    "tpu.trace_stop"() : () -> ()
    %cst_39 = arith.constant 0.353553385 : f32
    %112 = vector.broadcast %cst_39 : f32 to vector<1x8x8xf32>
    %113 = arith.mulf %111, %112 : vector<1x8x8xf32>
    %114 = arith.addf %113, %38 : vector<1x8x8xf32>
    %cst_40 = arith.constant dense<0xFF800000> : vector<1x8xf32>
    %115 = vector.multi_reduction <maximumf>, %114, %cst_40 [2] : vector<1x8x8xf32> to vector<1x8xf32>
    %116 = vector.shape_cast %115 : vector<1x8xf32> to vector<1x8x1xf32>
    %117 = vector.broadcast %116 : vector<1x8x1xf32> to vector<1x8x8xf32>
    %118 = arith.subf %114, %117 : vector<1x8x8xf32>
    %119 = math.exp %118 : vector<1x8x8xf32>
    %cst_41 = arith.constant dense<0.000000e+00> : vector<1x8xf32>
    %120 = vector.multi_reduction <add>, %119, %cst_41 [2] : vector<1x8x8xf32> to vector<1x8xf32>
    %121 = vector.shape_cast %120 : vector<1x8xf32> to vector<1x8x1xf32>
    %122 = tpu.reciprocal %121 {approx = true} : vector<1x8x1xf32> -> vector<1x8x1xf32>
    %123 = vector.broadcast %122 : vector<1x8x1xf32> to vector<1x8x8xf32>
    %124 = arith.mulf %119, %123 : vector<1x8x8xf32>
    %125 = arith.truncf %124 : vector<1x8x8xf32> to vector<1x8x8xbf16>
    "tpu.trace_start"() <{level = 10 : i32, message = "bqk,bkd->bqd"}> : () -> ()
    %cst_42 = arith.constant dense<0.000000e+00> : vector<1x8x8xf32>
    %126 = tpu.matmul %125, %110, %cst_42 {dimension_numbers = #tpu.dot_dimension_numbers<[2], [1], [1], [2], [0, 0, 0, 1, 1, 2], [0], [0]>} : vector<1x8x8xbf16>, vector<1x8x8xbf16>, vector<1x8x8xf32> -> vector<1x8x8xf32>
    "tpu.trace_stop"() : () -> ()
    %127 = tpu.concatenate %60, %82, %104, %126 in 2 : vector<1x8x8xf32>, vector<1x8x8xf32>, vector<1x8x8xf32>, vector<1x8x8xf32> -> vector<1x8x32xf32>
    %128 = vector.shape_cast %127 : vector<1x8x32xf32> to vector<8x32xf32>
    %129 = arith.truncf %128 : vector<8x32xf32> to vector<8x32xbf16>
    %c0_43 = arith.constant 0 : index
    %c0_44 = arith.constant 0 : index
    %c0_45 = arith.constant 0 : index
    %130 = vector.load %arg9[%c0_43, %c0_44, %c0_45] : memref<1x32x32xbf16, #tpu.memory_space<vmem>>, vector<1x32x32xbf16>
    %131 = vector.shape_cast %130 : vector<1x32x32xbf16> to vector<32x32xbf16>
    %cst_46 = arith.constant dense<0.000000e+00> : vector<8x32xf32>
    %132 = tpu.matmul %129, %131, %cst_46 {dimension_numbers = #tpu.dot_dimension_numbers<[1], [0], [0], [1], [0, 0, 1, 1], [], []>} : vector<8x32xbf16>, vector<32x32xbf16>, vector<8x32xf32> -> vector<8x32xf32>
    %133 = vector.shape_cast %132 : vector<8x32xf32> to vector<1x8x32xf32>
    %134 = arith.addf %3, %133 : vector<1x8x32xf32>
    %135 = arith.mulf %134, %134 : vector<1x8x32xf32>
    %cst_47 = arith.constant dense<0.000000e+00> : vector<1x8xf32>
    %136 = vector.multi_reduction <add>, %135, %cst_47 [2] : vector<1x8x32xf32> to vector<1x8xf32>
    %137 = vector.shape_cast %136 : vector<1x8xf32> to vector<1x8x1xf32>
    %cst_48 = arith.constant 3.200000e+01 : f32
    %138 = vector.broadcast %cst_48 : f32 to vector<1x8x1xf32>
    %139 = arith.divf %137, %138 : vector<1x8x1xf32>
    %cst_49 = arith.constant 9.99999997E-7 : f32
    %140 = vector.broadcast %cst_49 : f32 to vector<1x8x1xf32>
    %141 = arith.addf %139, %140 : vector<1x8x1xf32>
    %142 = math.rsqrt %141 : vector<1x8x1xf32>
    %143 = vector.broadcast %142 : vector<1x8x1xf32> to vector<1x8x32xf32>
    %144 = arith.mulf %134, %143 : vector<1x8x32xf32>
    %c0_50 = arith.constant 0 : index
    %c0_51 = arith.constant 0 : index
    %c0_52 = arith.constant 0 : index
    %145 = vector.load %arg10[%c0_50, %c0_51, %c0_52] : memref<1x1x32xf32, #tpu.memory_space<vmem>>, vector<1x1x32xf32>
    %146 = vector.broadcast %145 : vector<1x1x32xf32> to vector<1x8x32xf32>
    %147 = arith.mulf %144, %146 : vector<1x8x32xf32>
    %148 = vector.shape_cast %147 : vector<1x8x32xf32> to vector<8x32xf32>
    %149 = arith.truncf %148 : vector<8x32xf32> to vector<8x32xbf16>
    %c0_53 = arith.constant 0 : index
    %c0_54 = arith.constant 0 : index
    %c0_55 = arith.constant 0 : index
    %150 = vector.load %arg11[%c0_53, %c0_54, %c0_55] : memref<1x32x128xbf16, #tpu.memory_space<vmem>>, vector<1x32x128xbf16>
    %151 = vector.shape_cast %150 : vector<1x32x128xbf16> to vector<32x128xbf16>
    %cst_56 = arith.constant dense<0.000000e+00> : vector<8x128xf32>
    %152 = tpu.matmul %149, %151, %cst_56 {dimension_numbers = #tpu.dot_dimension_numbers<[1], [0], [0], [1], [0, 0, 1, 1], [], []>} : vector<8x32xbf16>, vector<32x128xbf16>, vector<8x128xf32> -> vector<8x128xf32>
    %153 = vector.extract_strided_slice %152 {offsets = [0, 0], sizes = [8, 64], strides = [1, 1]} : vector<8x128xf32> to vector<8x64xf32>
    %154 = vector.extract_strided_slice %152 {offsets = [0, 64], sizes = [8, 64], strides = [1, 1]} : vector<8x128xf32> to vector<8x64xf32>
    %155 = arith.negf %153 : vector<8x64xf32>
    %156 = math.exp %155 : vector<8x64xf32>
    %cst_57 = arith.constant 1.000000e+00 : f32
    %157 = vector.broadcast %cst_57 : f32 to vector<8x64xf32>
    %158 = arith.addf %157, %156 : vector<8x64xf32>
    %159 = arith.divf %157, %158 : vector<8x64xf32>
    %160 = arith.mulf %153, %159 : vector<8x64xf32>
    %161 = arith.mulf %160, %154 : vector<8x64xf32>
    %162 = arith.truncf %161 : vector<8x64xf32> to vector<8x64xbf16>
    %c0_58 = arith.constant 0 : index
    %c0_59 = arith.constant 0 : index
    %c0_60 = arith.constant 0 : index
    %163 = vector.load %arg12[%c0_58, %c0_59, %c0_60] : memref<1x64x32xbf16, #tpu.memory_space<vmem>>, vector<1x64x32xbf16>
    %164 = vector.shape_cast %163 : vector<1x64x32xbf16> to vector<64x32xbf16>
    %cst_61 = arith.constant dense<0.000000e+00> : vector<8x32xf32>
    %165 = tpu.matmul %162, %164, %cst_61 {dimension_numbers = #tpu.dot_dimension_numbers<[1], [0], [0], [1], [0, 0, 1, 1], [], []>} : vector<8x64xbf16>, vector<64x32xbf16>, vector<8x32xf32> -> vector<8x32xf32>
    %166 = vector.shape_cast %165 : vector<8x32xf32> to vector<1x8x32xf32>
    %167 = arith.addf %134, %166 : vector<1x8x32xf32>
    %c0_62 = arith.constant 0 : index
    %c0_63 = arith.constant 0 : index
    %c0_64 = arith.constant 0 : index
    %168 = vector.load %arg15[%c0_62, %c0_63, %c0_64] : memref<1x8x32xf32, #tpu.memory_space<vmem>>, vector<1x8x32xf32>
    tpu.vector_store %arg15[%c0_62, %c0_63, %c0_64], %167 {strides = array<i32>} : memref<1x8x32xf32, #tpu.memory_space<vmem>>, vector<1x8x32xf32>,
    %c1_i32 = arith.constant 1 : i32
    %169 = arith.cmpi eq, %arg1, %c1_i32 : i32
    %170 = arith.extui %169 : i1 to i32
    %c0_i32_65 = arith.constant 0 : i32
    %171 = arith.cmpi ne, %170, %c0_i32_65 : i32
    scf.if %171 {
      %172 = arith.mulf %167, %167 : vector<1x8x32xf32>
      %cst_66 = arith.constant dense<0.000000e+00> : vector<1x8xf32>
      %173 = vector.multi_reduction <add>, %172, %cst_66 [2] : vector<1x8x32xf32> to vector<1x8xf32>
      %174 = vector.shape_cast %173 : vector<1x8xf32> to vector<1x8x1xf32>
      %cst_67 = arith.constant 3.200000e+01 : f32
      %175 = vector.broadcast %cst_67 : f32 to vector<1x8x1xf32>
      %176 = arith.divf %174, %175 : vector<1x8x1xf32>
      %cst_68 = arith.constant 9.99999997E-7 : f32
      %177 = vector.broadcast %cst_68 : f32 to vector<1x8x1xf32>
      %178 = arith.addf %176, %177 : vector<1x8x1xf32>
      %179 = math.rsqrt %178 : vector<1x8x1xf32>
      %180 = vector.broadcast %179 : vector<1x8x1xf32> to vector<1x8x32xf32>
      %181 = arith.mulf %167, %180 : vector<1x8x32xf32>
      %c0_69 = arith.constant 0 : index
      %c0_70 = arith.constant 0 : index
      %c0_71 = arith.constant 0 : index
      %182 = vector.load %arg13[%c0_69, %c0_70, %c0_71] : memref<1x1x32xf32, #tpu.memory_space<vmem>>, vector<1x1x32xf32>
      %183 = vector.broadcast %182 : vector<1x1x32xf32> to vector<1x8x32xf32>
      %184 = arith.mulf %181, %183 : vector<1x8x32xf32>
      %c0_72 = arith.constant 0 : index
      %c0_73 = arith.constant 0 : index
      %c0_74 = arith.constant 0 : index
      %185 = vector.load %arg14[%c0_72, %c0_73, %c0_74] : memref<1x8x32xf32, #tpu.memory_space<vmem>>, vector<1x8x32xf32>
      tpu.vector_store %arg14[%c0_72, %c0_73, %c0_74], %184 {strides = array<i32>} : memref<1x8x32xf32, #tpu.memory_space<vmem>>, vector<1x8x32xf32>,
    } else {
    }
    return
  }
  func.func @transform_0(%arg0: i32, %arg1: i32) -> (i32, i32, i32) {
    %c0_i32 = arith.constant 0 : i32
    %c0_i32_0 = arith.constant 0 : i32
    %c0_i32_1 = arith.constant 0 : i32
    return %arg0, %c0_i32, %c0_i32_0 : i32, i32, i32
  }
  func.func @transform_1(%arg0: i32, %arg1: i32) -> (i32, i32, i32) {
    %c0_i32 = arith.constant 0 : i32
    %c0_i32_0 = arith.constant 0 : i32
    %c0_i32_1 = arith.constant 0 : i32
    %c0_i32_2 = arith.constant 0 : i32
    return %c0_i32, %c0_i32_0, %c0_i32_1 : i32, i32, i32
  }
  func.func @transform_2(%arg0: i32, %arg1: i32) -> (i32, i32, i32) {
    %c0_i32 = arith.constant 0 : i32
    %c0_i32_0 = arith.constant 0 : i32
    %c0_i32_1 = arith.constant 0 : i32
    %c0_i32_2 = arith.constant 0 : i32
    return %c0_i32, %c0_i32_0, %c0_i32_1 : i32, i32, i32
  }
  func.func @transform_3(%arg0: i32, %arg1: i32) -> (i32, i32) {
    %c0_i32 = arith.constant 0 : i32
    %c0_i32_0 = arith.constant 0 : i32
    %c0_i32_1 = arith.constant 0 : i32
    return %c0_i32, %c0_i32_0 : i32, i32
  }
  func.func @transform_4(%arg0: i32, %arg1: i32) -> (i32, i32) {
    %c0_i32 = arith.constant 0 : i32
    %c0_i32_0 = arith.constant 0 : i32
    %c0_i32_1 = arith.constant 0 : i32
    return %c0_i32, %c0_i32_0 : i32, i32
  }
  func.func @transform_5(%arg0: i32, %arg1: i32) -> (i32, i32, i32) {
    %c0_i32 = arith.constant 0 : i32
    %c0_i32_0 = arith.constant 0 : i32
    %c0_i32_1 = arith.constant 0 : i32
    return %arg1, %c0_i32, %c0_i32_0 : i32, i32, i32
  }
  func.func @transform_6(%arg0: i32, %arg1: i32) -> (i32, i32, i32) {
    %c0_i32 = arith.constant 0 : i32
    %c0_i32_0 = arith.constant 0 : i32
    %c0_i32_1 = arith.constant 0 : i32
    return %arg1, %c0_i32, %c0_i32_0 : i32, i32, i32
  }
  func.func @transform_7(%arg0: i32, %arg1: i32) -> (i32, i32, i32) {
    %c0_i32 = arith.constant 0 : i32
    %c0_i32_0 = arith.constant 0 : i32
    %c0_i32_1 = arith.constant 0 : i32
    return %arg1, %c0_i32, %c0_i32_0 : i32, i32, i32
  }
  func.func @transform_8(%arg0: i32, %arg1: i32) -> (i32, i32, i32) {
    %c0_i32 = arith.constant 0 : i32
    %c0_i32_0 = arith.constant 0 : i32
    %c0_i32_1 = arith.constant 0 : i32
    return %arg1, %c0_i32, %c0_i32_0 : i32, i32, i32
  }
  func.func @transform_9(%arg0: i32, %arg1: i32) -> (i32, i32, i32) {
    %c0_i32 = arith.constant 0 : i32
    %c0_i32_0 = arith.constant 0 : i32
    %c0_i32_1 = arith.constant 0 : i32
    return %arg1, %c0_i32, %c0_i32_0 : i32, i32, i32
  }
  func.func @transform_10(%arg0: i32, %arg1: i32) -> (i32, i32, i32) {
    %c0_i32 = arith.constant 0 : i32
    %c0_i32_0 = arith.constant 0 : i32
    %c0_i32_1 = arith.constant 0 : i32
    return %arg1, %c0_i32, %c0_i32_0 : i32, i32, i32
  }
  func.func @transform_11(%arg0: i32, %arg1: i32) -> (i32, i32, i32) {
    %c0_i32 = arith.constant 0 : i32
    %c0_i32_0 = arith.constant 0 : i32
    %c0_i32_1 = arith.constant 0 : i32
    %c0_i32_2 = arith.constant 0 : i32
    return %c0_i32, %c0_i32_0, %c0_i32_1 : i32, i32, i32
  }
  func.func @transform_12(%arg0: i32, %arg1: i32) -> (i32, i32, i32) {
    %c0_i32 = arith.constant 0 : i32
    %c0_i32_0 = arith.constant 0 : i32
    %c0_i32_1 = arith.constant 0 : i32
    return %arg0, %c0_i32, %c0_i32_0 : i32, i32, i32
  }
}

</mosaic_0001>

<bundles_post_ra>
// kernel: tpu_custom_call.1
= control target key start
LH: loop header
LB: loop body
LE: loop exit
PB: predicated region body
PF: predicated region fallthrough
CT: control target
= control target key end

     0   :  { %s2895_s0 = inlined_call_operand.hbm [shape: f32[2,8,32], index: 0, kind: input, shape index: {}]   ;;  %s2896_s1 = inlined_call_operand.hbm [shape: f32[1,8,64], index: 1, kind: input, shape index: {}]   ;;  %s2897_s2 = inlined_call_operand.hbm [shape: f32[1,8,64], index: 2, kind: input, shape index: {}]   ;;  %s2898_s3 = inlined_call_operand.vmem [shape: bf16[64,64], index: 3, kind: input, shape index: {}]   ;;  %s2899_s4 = inlined_call_operand.hbm [shape: f32[8,8], index: 4, kind: input, shape index: {}]   ;;  %s2900_s5 = inlined_call_operand.vmem [shape: f32[2,1,32], index: 5, kind: input, shape index: {}]   ;;  %s2901_s6 = inlined_call_operand.vmem [shape: bf16[2,32,96], index: 6, kind: input, shape index: {}]   ;;  %s2902_s7 = inlined_call_operand.vmem [shape: bf16[2,32,32], index: 7, kind: input, shape index: {}]   ;;  %s2903_s8 = inlined_call_operand.vmem [shape: f32[2,1,32], index: 8, kind: input, shape index: {}]   ;;  %s2904_s9 = inlined_call_operand.hbm [shape: bf16[2,32,128], index: 9, kind: input, shape index: {}]   ;;  %s2905_s10 = inlined_call_operand.vmem [shape: bf16[2,64,32], index: 10, kind: input, shape index: {}]   ;;  %s2906_s11 = inlined_call_operand.vmem [shape: f32[1,1,32], index: 11, kind: input, shape index: {}]   ;;  %s2907_s12 = inlined_call_operand.hbm [shape: f32[2,8,32], index: 12, kind: output, shape index: {}]  }
   0x1   :  { %2925 = sst [smem:[#allocation27_spill]] %s2895_s0 }
   0x2   :  { %2926 = sst [smem:[#allocation28_spill]] %s2896_s1 }
   0x3   :  { %2927 = sst [smem:[#allocation29_spill]] %s2897_s2 }
   0x4   :  { %2928 = sst [smem:[#allocation30_spill]] %s2898_s3 }
   0x5   :  { %2929 = sst [smem:[#allocation31_spill]] %s2899_s4 }
   0x6   :  { %2930 = sst [smem:[#allocation32_spill]] %s2900_s5 }
   0x7   :  { %2931 = sst [smem:[#allocation33_spill]] %s2901_s6 }
   0x8   :  { %2932 = sst [smem:[#allocation34_spill]] %s2902_s7 }
   0x9   :  { %2933 = sst [smem:[#allocation35_spill]] %s2903_s8 }
   0xa   :  { %2934 = sst [smem:[#allocation36_spill]] %s2904_s9 }
   0xb   :  { %2935 = sst [smem:[#allocation37_spill]] %s2905_s10 }
   0xc   :  { %2936 = sst [smem:[#allocation38_spill]] %s2906_s11 }
   0xd   :  { %2937 = sst [smem:[#allocation39_spill]] %s2907_s12 }
   0xe   :  { %17 = vsyncpa [#allocation4], 0 }
   0xf   :  { %19 = vsyncpa [#allocation4 + $0x1], 0 }
  0x10   :  { %20 = vsyncpa [#allocation7], 0 }
  0x11   :  { %21 = vsyncpa [#allocation10], 0 }
  0x12   :  { %22 = vsyncpa [#allocation5], 0 }
  0x13   :  { %24 = vsyncpa [#allocation5 + $0x1], 0  ;;  %s2438_s21 = smov 0   ;;  %s2440_s22 = smov 0  }
  0x14   :  { %s2442_s23 = smov 0   ;;  %s2444_s24 = smov 0  }
  0x15   :  { %s2446_s25 = smov 0   ;;  %s2448_s26 = smov 0  }
  0x16   :  { %s2450_s27 = smov 0   ;;  %s2452_s28 = smov 0  }
  0x17   :  { %s2454_s29 = smov 0   ;;  %s2456_s30 = smov 0  }
  0x18   :  { %s2458_s13 = smov 0  }
  0x19 LB: > { %2938 = sst [smem:[#allocation18_spill]] %s2319_s24  ;;  %s2492_s14 = sadd.s32 4294967295, %s2347_s13   ;;  %s2347_s13 = sphi %s2458_s13, %s30_s13   ;;  %s2343_s30 = sphi %s2456_s30, %s3002_s30   ;;  %s2339_s29 = sphi %s2454_s29, %s2994_s29   ;;  %s2335_s28 = sphi %s2452_s28, %s2993_s28   ;;  %s2331_s27 = sphi %s2450_s27, %s2992_s27   ;;  %s2327_s26 = sphi %s2448_s26, %s3001_s26   ;;  %s2323_s25 = sphi %s2446_s25, %s3000_s25   ;;  %s2319_s24 = sphi %s2444_s24, %s2999_s24   ;;  %s2315_s23 = sphi %s2442_s23, %s2998_s23   ;;  %s2311_s22 = sphi %s2440_s22, %s2997_s22   ;;  %s2307_s21 = sphi %s2438_s21, %s2996_s21  }
  0x1a   : > { %2939 = sst [smem:[#allocation19_spill]] %s2335_s28  ;;  %p276_p0 = scmp.ne.s32.totalorder %s2311_s22, %s2307_s21 }
  0x1b   : > { %2940 = sst [smem:[#allocation20_spill]] %s2339_s29  ;;  %p2913_p1 = scmp.eq.s32.totalorder %s2492_s14, 0 }
  0x1c   : > { %2941 = sst [smem:[#allocation21_spill]] %s2343_s30  ;;  %p1690_p2 = scmp.ge.s32.totalorder %s2347_s13, 1 }
  0x1d   : > { %2942 = sst [smem:[#allocation22_spill]] %s2347_s13  ;;  %p360_p3 = scmp.lt.s32.totalorder %s2347_s13, 5 }
  0x1e   : > { %p2500_p4 = por %p276_p0, %p2913_p1  ;;  %s2349_s17 = smov [#allocation6]  }
  0x1f   : > { %p2504_p5 = pnand %p1690_p2, %p360_p3  ;;  %s373_s18 = sshll.u32 %s2349_s17, 4  ;;  %s374_s18 = int_to_ptr.vmem [resolvable:$true] %s373_s18 }
  0x20   : > { %s2943_s15 = scalar_select %p2500_p4, 1, 0 }
  0x21   : > { %s2944_s16 = scalar_select %p2504_p5, 1, 0 }
  0x22   : > { %p1903_p6 = pneg %p2504_p5  ;;  %s2092_s20 = scalar_lea.vmem %s374_s18, 128 }
  0x23   : > { %p2093_p9 = scmp.ne.s32.totalorder %s374_s18, %s2092_s20  ;;  %p2100_p12 = scmp.lt.s32.totalorder %s374_s18, %s374_s18 }
  0x24   : > { %p2512_p7 = pnand %p1903_p6, %p2913_p1  ;;  %p2101_p13 = scmp.lt.s32.totalorder %s2092_s20, %s2092_s20 }
  0x26   : > { %p2910_p8 = pneg %p2512_p7  ;;  %p2102_p0 = por %p2101_p13, %p2100_p12 }
  0x28   : > { %p2095_p10 = pnand %p2093_p9, %p2910_p8 }
  0x2a   : > { %p2096_p11 = pneg %p2095_p10 }
  0x2c   : > { %p2103_p2 = pnand %p2102_p0, %p2096_p11 }
  0x2e   : > { %2106 = shalt.err (!%p2103_p2)
}
  0x2f   : > { %s2946_s1 = sld [smem:[#allocation28_spill]]  ;;  %s1689_s20 = sadd.s32 4294967294, %s2347_s13  }
  0x30   : > { %s39_s21 = sadd.s32 1, %s2339_s29  ;;  %s42_s17 = sadd.s32 1, %s2343_s30 }
  0x31   : > { %p40_p3 = scmp.ge.s32.totalorder %s39_s21, 2  ;;  %s49_s12 = sadd.s32 1, %s2327_s26 }
  0x32   : > { %p2911_p6 = scmp.ne.s32.totalorder %s2327_s26, %s2323_s25  ;;  %p57_p9 = scmp.eq.s32.totalorder %s2347_s13, 0 }
  0x33   : > { %s3004_s21 = smov (%p40_p3, %s39_s21), 0  ;;  %s3006_s17 = smov (!%p40_p3, %s42_s17), %s2343_s30 }
  0x34   : > { %2947 = sst [smem:[#allocation23_spill]] %s3004_s21  ;;  %p2541_p10 = por %p57_p9, %p2911_p6 }
  0x35   : > { %1906 = dma.hbm_to_vmem [thread:$0]  (!%p2512_p7), %s2946_s1, 128, %s374_s18, [#allocation7]  }
  0x36   : > { %p2914_p11 = scmp.ne.s32.totalorder %s2323_s25, %s2319_s24  ;;  %p44_p12 = scmp.ge.s32.totalorder %s3006_s17, 2 }
  0x37   : > { %s260_s1 = ssub.s32 %s2339_s29, %s3004_s21  ;;  %s263_s11 = sadd.s32 1, %s2315_s23 }
  0x38   : > { %p2554_p13 = por %p2913_p1, %p2914_p11  ;;  %p261_p0 = scmp.eq.s32.totalorder %s260_s1, 0 }
  0x39   : > { %s3008_s17 = smov (%p44_p12, %s3006_s17), 0  ;;  %p270_p2 = scmp.ne.s32.totalorder %s2315_s23, %s2311_s22 }
  0x3a   : > { %s2949_s28 = scalar_select %p2554_p13, 1, 0 }
  0x3b   : > { %2950 = sst [smem:[#allocation24_spill]] %s3008_s17  ;;  %s46_s3 = ssub.s32 %s2343_s30, %s3008_s17 }
  0x3c   : > { %p347_p3 = scmp.eq.s32.totalorder %s2492_s14, 3  ;;  %p47_p8 = scmp.eq.s32.totalorder %s46_s3, 0 }
  0x3d   : > { %p2568_p6 = por %p270_p2, %p57_p9  ;;  %p2954_p1 = scmp.ne.s32.totalorder %s2327_s26, %s2323_s25 }
  0x3e   : > { %s2573_s10 = scalar_select %p261_p0, %s2315_s23, %s263_s11  }
  0x3f   : > { %s2576_s8 = scalar_select %p47_p8, %s2327_s26, %s49_s12  }
  0x40   : > { %2952 = sst [smem:[#allocation25_spill]] %s2573_s10  ;;  %p2581_p12 = por %p347_p3, %p2954_p1 }
  0x41   : > { %2953 = sst [smem:[#allocation26_spill]] %s2576_s8  ;;  %p353_p11 = scmp.eq.s32.totalorder %s1689_s20, 3 }
  0x42   : > { %p1927_p4 = scmp.lt.s32.totalorder %s2347_s13, 4  ;;  %s412_s17 = sand.u32 1, %s2347_s13  }
  0x43   : > { %p2956_p13 = scmp.ne.s32.totalorder %s2323_s25, %s2319_s24  ;;  %s414_s7 = sand.u32 1, %s2327_s26  }
  0x44   : > { %s1696_s6 = sshll.u32 %s2343_s30, 7  ;;  %s1695_s5 = sshll.u32 %s414_s7, 3 }
  0x45   : > { %p2590_p5 = por %p353_p11, %p2956_p13  ;;  %s2958_s0 = sld [smem:[#allocation27_spill]] }
  0x46   : > { %p2601_p1 = pnand %p1927_p4, %p2541_p10  ;;  %s416_s20 = scalar_lea.vmem [#allocation3], %s1695_s5 }
  0x47   : > { %s2957_s3 = scalar_select %p2590_p5, 1, 0 }
  0x48   : > { %s423_s13 = sshll.u32 %s416_s20, 4  ;;  %p2607_p8 = pnand %p1927_p4, %p2568_p6  ;;  %s424_s13 = int_to_ptr.vmem [resolvable:$true] %s423_s13 }
  0x49   : > { %s2611_s30 = scalar_lea.sflag [#allocation4], %s412_s17  ;;  %p2109_p9 = pneg %p2601_p1 }
  0x4a   : > { %s2120_s7 = scalar_lea.vmem %s424_s13, 128 }
  0x4b   : > { %s421_s12 = scalar_lea.hbm %s2958_s0, %s1696_s6  ;;  %p2121_p11 = scmp.ne.s32.totalorder %s424_s13, %s2120_s7 }
  0x4c   : > { %s2350_s6 = smov [#allocation3]  }
  0x4d   : > { %p2123_p13 = pnand %p2121_p11, %p2109_p9  ;;  %s2125_s10 = sshll.u32 %s2350_s6, 4  ;;  %s2126_s10 = int_to_ptr.vmem [resolvable:$false] %s2125_s10 }
  0x4e   : > { %s2127_s18 = scalar_lea.vmem %s2126_s10, 256  ;;  %p2128_p0 = scmp.lt.s32.totalorder %s424_s13, %s2126_s10 }
  0x4f   : > { %p2124_p10 = pneg %p2123_p13  ;;  %p2129_p2 = scmp.lt.s32.totalorder %s2127_s18, %s2120_s7 }
  0x51   : > { %p2130_p3 = por %p2129_p2, %p2128_p0 }
  0x53   : > { %p2131_p4 = pnand %p2130_p3, %p2124_p10 }
  0x55   : > { %2134 = shalt.err (!%p2131_p4)
}
  0x56   : > { %1916 = dma.hbm_to_vmem [thread:$0]  (!%p2601_p1), %s421_s12, 128, %s424_s13, %s2611_s30  }
  0x57   : > { %s2351_s5 = smov [#allocation8]   ;;  %s2352_s17 = smov [#allocation9]  }
  0x58   : > { %s384_s21 = sshll.u32 %s2351_s5, 4  ;;  %s398_s11 = sshll.u32 %s2352_s17, 4  ;;  %s385_s21 = int_to_ptr.vmem [resolvable:$true] %s384_s21  ;;  %s399_s11 = int_to_ptr.vmem [resolvable:$true] %s398_s11 }
  0x59   : > { %s2146_s20 = scalar_lea.vmem %s385_s21, 128  ;;  %p2961_p9 = pneg %p2512_p7 }
  0x5a   : > { %p2147_p6 = scmp.ne.s32.totalorder %s385_s21, %s2146_s20  ;;  %p2154_p5 = scmp.lt.s32.totalorder %s385_s21, %s385_s21 }
  0x5b   : > { %p2155_p0 = scmp.lt.s32.totalorder %s2146_s20, %s2146_s20 }
  0x5c   : > { %p2149_p11 = pnand %p2147_p6, %p2961_p9 }
  0x5d   : > { %p2156_p10 = por %p2155_p0, %p2154_p5 }
  0x5e   : > { %p2150_p13 = pneg %p2149_p11 }
  0x60   : > { %p2157_p2 = pnand %p2156_p10, %p2150_p13 }
  0x62   : > { %2160 = shalt.err (!%p2157_p2)
}
  0x63   : > { %s2962_s2 = sld [smem:[#allocation29_spill]]  ;;  %s460_s12 = sand.u32 1, %s2315_s23  }
  0x64   : > { %s2172_s7 = scalar_lea.vmem %s399_s11, 128  ;;  %p2963_p3 = pmov %p2961_p9 }
  0x65   : > { %p2173_p1 = scmp.ne.s32.totalorder %s399_s11, %s2172_s7  ;;  %p2180_p9 = scmp.lt.s32.totalorder %s399_s11, %s399_s11 }
  0x66   : > { %p2181_p5 = scmp.lt.s32.totalorder %s2172_s7, %s2172_s7 }
  0x67   : > { %p2175_p4 = pnand %p2173_p1, %p2963_p3 }
  0x68   : > { %p2182_p11 = por %p2181_p5, %p2180_p9 }
  0x69   : > { %1909 = dma.hbm_to_vmem [thread:$0]  (!%p2512_p7), %s2962_s2, 128, %s385_s21, [#allocation7]  }
  0x6a   : > { %p2176_p6 = pneg %p2175_p4 }
  0x6c   : > { %p2183_p13 = pnand %p2182_p11, %p2176_p6 }
  0x6e   : > { %2186 = shalt.err (!%p2183_p13)
}
  0x6f   : > { %s2964_s4 = sld [smem:[#allocation31_spill]]  ;;  %s1697_s18 = sshll.u32 %s460_s12, 4 }
  0x70   : > { %s1750_s5 = sshll.u32 %s2339_s29, 8  ;;  %s2965_s9 = sld [smem:[#allocation36_spill]] }
  0x71   : > { %s462_s8 = scalar_lea.vmem [#allocation11], %s1697_s18  ;;  %p2189_p0 = pneg %p2607_p8 }
  0x72   : > { %s469_s13 = sshll.u32 %s462_s8, 4  ;;  %s2353_s19 = smov [#allocation11]   ;;  %s470_s13 = int_to_ptr.vmem [resolvable:$true] %s469_s13 }
  0x73   : > { %s2200_s7 = scalar_lea.vmem %s470_s13, 256  ;;  %s2205_s6 = sshll.u32 %s2353_s19, 4  ;;  %s2206_s6 = int_to_ptr.vmem [resolvable:$false] %s2205_s6 }
  0x74   : > { %p2201_p10 = scmp.ne.s32.totalorder %s470_s13, %s2200_s7  ;;  %s2207_s10 = scalar_lea.vmem %s2206_s6, 512 }
  0x75   : > { %1912 = dma.hbm_to_vmem [thread:$0]  (!%p2512_p7), %s2964_s4, 128, %s399_s11, [#allocation10]  }
  0x76   : > { %s468_s20 = scalar_lea.hbm %s2965_s9, %s1750_s5  ;;  %p2203_p2 = pnand %p2201_p10, %p2189_p0 }
  0x77   : > { %p2208_p7 = scmp.lt.s32.totalorder %s470_s13, %s2206_s6  ;;  %p2209_p3 = scmp.lt.s32.totalorder %s2207_s10, %s2200_s7 }
  0x78   : > { %p2204_p1 = pneg %p2203_p2 }
  0x79   : > { %p2210_p4 = por %p2209_p3, %p2208_p7 }
  0x7b   : > { %p2211_p6 = pnand %p2210_p4, %p2204_p1 }
  0x7d   : > { %2214 = shalt.err (!%p2211_p6)
}
  0x7e   : > { %s2354_s11 = smov 64   ;;  %s2355_s12 = smov 4  }
  0x7f   : > { %1919 = dma.hbm_to_vmem [thread:$0]  (!%p2607_p8), %s468_s20, 256, %s470_s13, %s2611_s30, %s2354_s11, %s2354_s11, %s2355_s12  }
  0x80   : > { %p2966_p9 = scmp.ne.s32.totalorder %s2944_s16, 0 }
  0x81   : > { %s491_s18 = sand.u32 (!%p2966_p9), 1, %s2492_s14   ;;  %s2923_s5 = sand.u32 (!%p2966_p9), 1, %s2323_s25  }
  0x82   : > { %489 = sbr.rel (%p2966_p9) target bundleno = 2784 (0xae0), region = 68  ;;  %s2650_s21 = sshll.u32 (!%p2966_p9), %s2923_s5, 3 }
  0x83   : > { %s492_s17 = scalar_lea.sflag (!%p2966_p9), [#allocation4], %s491_s18  ;;  %s495_s8 = scalar_lea.vmem (!%p2966_p9), [#allocation3], %s2650_s21 }
  0x84   : > { %p2967_p5 = scmp.ne.s32.totalorder (!%p2966_p9), %s2949_s28, 0 }
  0x87   : > { %2286 = dma.done.wait (%p2967_p5), %s492_s17, 128  }
  0x88   : > { %2288 = vsyncadd (%p2967_p5), %s492_s17, 4294967168  ;;  %p2968_p8 = scmp.eq.s32.totalorder %s2492_s14, 0 }
  0x8a   : > { %2290 = dma.done.wait (%p2968_p8), [#allocation7], 256   ;;  %p2969_p11 = pmov %p2968_p8 }
  0x8b   : > { %p2970_p13 = pmov %p2968_p8 }
  0x8c   : > { %2292 = vsyncadd (%p2969_p11), [#allocation7], 4294967040 }
  0x8d   : > { %2294 = dma.done.wait (%p2970_p13), [#allocation10], 128   ;;  %p2971_p0 = pmov %p2968_p8 }
  0x8e   : > { %s514_s24 = sand.u32 1, %s2311_s22   ;;  %p2972_p10 = scmp.ne.s32.totalorder %s2943_s15, 0 }
  0x8f   : > { %2296 = vsyncadd (%p2971_p0), [#allocation10], 4294967168  ;;  %s2666_s30 = sshll.u32 %s514_s24, 4 }
  0x90   : > { %2298 = dma.done.wait (%p2972_p10), %s492_s17, 256  }
  0x91   : > { %2300 = vsyncadd (%p2972_p10), %s492_s17, 4294967040  ;;  %p583_p2 = scmp.lt.s32.totalorder %s2331_s27, 1  ;;  %s2973_s13 = sld [smem:[#allocation32_spill]] }
  0x92   : > { %s2974_s11 = sld [smem:[#allocation33_spill]]  ;;  %p1713_p1 = scmp.ne.s32.totalorder %s2331_s27, 0 }
  0x93   : > { %s2675_s16 = scalar_select %p583_p2, %s2331_s27, 1 }
  0x94   : > { %s2975_s17 = sld [smem:[#allocation34_spill]] }
  0x95   : > { %s1751_s19 = sshll.u32 %s2675_s16, 4  ;;  %s2976_s0 = sld [smem:[#allocation35_spill]] }
  0x96   : > { %s1753_s4 = sshll.u32 %s2675_s16, 5  ;;  %s2977_s9 = sld [smem:[#allocation37_spill]] }
  0x97   : > { %s585_s7 = scalar_lea.vmem %s2973_s13, %s2675_s16  ;;  %s582_s13 = scalar_lea.vmem [#allocation12], %s2650_s21 }
  0x98   : > { %s590_s15 = scalar_lea.vmem %s2974_s11, %s1751_s19  ;;  %608 = sbr.rel (%p1713_p1) target bundleno = 159 (0x9f), region = 92 }
  0x9a   : > { %s2688_s24 = scalar_lea.vmem %s2975_s17, %s1751_s19 }
  0x9b   : > { %s598_s2 = scalar_lea.vmem %s2976_s0, %s2675_s16 }
  0x9c   : > { %s2698_s29 = scalar_lea.vmem %s2977_s9, %s1753_s4 }
  0x9d   : > { %v609_v0 = vld [vmem:[%s495_s8] sm:$0xff]  ;;  %vm610_vm0 = vcmask 261120  }
  0x9e   : > { %611 = vst.msk [vmem:[#allocation2] sm:$0xff] %vm610_vm0, %v609_v0 }
  0x9f PF: > { %vm614_vm1 = vcmask 261120   ;;  %v2041_v4 = vld [vmem:[%s590_s15 + $0x8] sm:$0xff]   ;;  %v2356_v5 = vmov 0.0   ;;  %vm2357_vm2 = vmmov 0   ;;  %v2042_v6 = vld [vmem:[%s590_s15] sm:$0xff]   ;;  %s2978_s9 = sld [smem:[#allocation30_spill]] }
  0xa0   : > { %1789 = vmatprep.subr.bf16.mxu0 %v2356_v5  ;;  %1793 = vmatprep.mubr.msk.bf16.mxu0 %vm2357_vm2, %v2356_v5  ;;  %v1714_v14 = vld [vmem:[%s585_s7] ss:$0 sm:$0xff]  ;;  %vm724_vm3 = vcmask 523264   ;;  %v768_v24 = vld [vmem:[#allocation6] sm:$0xff]  ;;  %s2358_s7 = smov 88   ;;  %s2359_s18 = smov 96  }
  0xa1   : > { %1790 = vmatpush3.bf16.msra.mxu0 %v2041_v4  ;;  %1797 = vmatprep.subr.bf16.mxu1 %v2356_v5  ;;  %v770_v25 = vld [vmem:[#allocation8] sm:$0xff]  ;;  %s2360_s17 = smov 120   ;;  %s2361_s14 = smov 80   ;;  %vm778_vm4 = vcmask 64512   ;;  %v773_v47 = vld [vmem:[#allocation9] sm:$0xff]  ;;  %vm845_vm5 = vcmask 1043456  }
  0xa2   : > { %1791 = vmatprep.subr.bf16.mxu0 %v2356_v5  ;;  %1805 = vmatprep.mubr.msk.bf16.mxu1 %vm2357_vm2, %v2356_v5  ;;  %s2362_s20 = smov 112   ;;  %s2363_s0 = smov 72   ;;  %vm1238_vm6 = vcmask 130048   ;;  %vm1240_vm7 = vcmask 195584  }
  0xa3   : > { %s2364_s4 = smov 104   ;;  %s2365_s5 = smov 56  }
  0xa4   : > { %s2366_s8 = smov 64   ;;  %s2367_s28 = smov 40  }
  0xa5   : > { %v2702_v1 = vld [vmem:[#allocation2] sm:$0xff]  ;;  %1792 = vmatpush3.bf16.msra.mxu0 %v2042_v6  ;;  %v2043_v7 = vld [vmem:[%s2978_s9 + $0x18] sm:$0xff]   ;;  %v2044_v8 = vld [vmem:[%s2978_s9 + $0x10] sm:$0xff]   ;;  %s2368_s19 = smov 48   ;;  %s2369_s6 = smov 8  }
  0xa6   : > { %v613_v2 = vmul.f32 %v2702_v1, %v2702_v1  ;;  %1809 = vmatprep.subr.bf16.mxu0 %v2356_v5  ;;  %1798 = vmatpush3.bf16.msra.mxu1 %v2043_v7  ;;  %v2045_v9 = vld [vmem:[%s2978_s9 + $0x8] sm:$0xff]   ;;  %v2046_v18 = vld [vmem:[%s2978_s9] sm:$0xff]   ;;  %s2370_s10 = smov 16   ;;  %s2371_s11 = smov 24  }
  0xa7   : > { %1799 = vmatprep.subr.bf16.mxu1 %v2356_v5  ;;  %p1744_p7 = scmp.ne.s32.totalorder %s2331_s27, 1 }
  0xa8   : > { %v615_v3 = vsel %vm614_vm1, %v613_v2, 0.0 }
  0xa9   : > { %616 = vadd.xlane.f32.xlu0 %v615_v3 }
  0xaa   : > { %1800 = vmatpush3.bf16.msra.mxu1 %v2044_v8 }
  0xab   : > { %1801 = vmatprep.subr.bf16.mxu1 %v2356_v5 }
  0xae   : > { %1802 = vmatpush3.bf16.msra.mxu1 %v2045_v9 }
  0xaf   : > { %1803 = vmatprep.subr.bf16.mxu1 %v2356_v5 }
  0xb2   : > { %1804 = vmatpush3.bf16.msra.mxu1 %v2046_v18 }
  0xb3   : > { %1821 = vmatprep.subr.bf16.mxu1 %v2356_v5 }
 0x132   : > { %v617_v10 = vpop.xlane.xlu0 %616 }
 0x133   : > { %v619_v11 = vmul.f32 0.03125, %v617_v10 }
 0x135   : > { %v620_v12 = vadd.f32 1e-06, %v619_v11 }
 0x137   : > { %2055 = vrsqrt.f32 %v620_v12 }
 0x144   : > { %v2056_v13 = vpop.eup %2055 }
 0x145   : > { %v622_v15 = vmul.f32 %v2056_v13, %v2702_v1 }
 0x147   : > { %v630_v16 = vmul.f32 %v1714_v14, %v622_v15 }
 0x149   : > { %v631_v17 = vpack.c.bf16 %v630_v16, %v630_v16 }
 0x14b   : > { %1794 = vmatmul.mubr.msk.bf16.vlgmr.msra.gmra.mxu0 %vm614_vm1, %v631_v17 }
 0x14c   : > { %1811 = vmatprep.mubr.msk.bf16.mxu0 %vm2357_vm2, %v2356_v5 }
 0x20b   : > { %v685_v19 = vpop.f32.mrf.mxu0 }
 0x20c   : > { %v2740_v20 = vpack.c.bf16 %v685_v19, %v685_v19  ;;  %v769_v27 = vmul.f32 %v768_v24, %v685_v19 }
 0x20d   : > { %v1795_v21 = vpop.f32.mrf.mxu0 }
 0x20e   : > { %1806 = vmatmul.mubr.msk.bf16.vlgmr.msra.gmra.mxu1 %vm724_vm3, %v2740_v20 }
 0x20f   : > { %v688_v22 = vpop.f32.mrf.mxu0  ;;  %1823 = vmatprep.mubr.msk.bf16.mxu1 %vm2357_vm2, %v2356_v5 }
 0x211   : > { %v1796_v23 = vpop.f32.mrf.mxu0 }
 0x2ce   : > { %v762_v26 = vpop.f32.mrf.mxu1 }
 0x2cf   : > { %v771_v28 = vmul.f32 %v770_v25, %v762_v26 }
 0x2d0   : > { %v1807_v29 = vpop.f32.mrf.mxu1 }
 0x2d1   : > { %v772_v30 = vadd.f32 %v771_v28, %v769_v27 }
 0x2d2   : > { %v765_v31 = vpop.f32.mrf.mxu1 }
 0x2d3   : > { %v774_v32 = vpack.c.bf16 %v772_v30, %v772_v30 }
 0x2d4   : > { %v1808_v33 = vpop.f32.mrf.mxu1 }
 0x2d5   : > { %891 = vrot.lane.b32.xlu1 %v774_v32, %s2358_s7  ;;  %776 = vrot.lane.b32.xlu0 %v774_v32, %s2359_s18 }
 0x2d9   : > { %889 = vrot.lane.b32.xlu1 %v774_v32, %s2360_s17 }
 0x2dd   : > { %1003 = vrot.lane.b32.xlu1 %v774_v32, %s2361_s14 }
 0x2e1   : > { %1001 = vrot.lane.b32.xlu1 %v774_v32, %s2362_s20 }
 0x2e5   : > { %1115 = vrot.lane.b32.xlu1 %v774_v32, %s2363_s0 }
 0x2e9   : > { %1113 = vrot.lane.b32.xlu1 %v774_v32, %s2364_s4 }
 0x347   : > { %v892_v34 = vpop.permute.xlu1 %891  ;;  %v777_v35 = vpop.permute.xlu0 %776 }
 0x348   : > { %v897_v36 = vsel %vm778_vm4, %v892_v34, 0  ;;  %v783_v37 = vsel %vm778_vm4, %v777_v35, 0 }
 0x349   : > { %1810 = vmatpush3.bf16.xpose.msra.mxu0 %v783_v37  ;;  %1822 = vmatpush3.bf16.xpose.msra.mxu1 %v897_v36 }
 0x34a   : > { %1833 = vmatprep.subr.bf16.mxu1 %v2356_v5  ;;  %1815 = vmatprep.subr.bf16.mxu0 %v2356_v5 }
 0x34b   : > { %v890_v38 = vpop.permute.xlu1 %889 }
 0x34f   : > { %v1004_v39 = vpop.permute.xlu1 %1003 }
 0x350   : > { %v1009_v40 = vsel %vm778_vm4, %v1004_v39, 0  ;;  %1812 = vmatmul.mubr.msk.bf16.vlgmr.msra.gmra.mxu0 %vm778_vm4, %v774_v32  ;;  %1824 = vmatmul.mubr.msk.bf16.vlgmr.msra.gmra.mxu1 %vm778_vm4, %v890_v38 }
 0x351   : > { %1834 = vmatpush3.bf16.xpose.msra.mxu1 %v1009_v40  ;;  %1835 = vmatprep.mubr.msk.bf16.mxu1 %vm2357_vm2, %v2356_v5 }
 0x352   : > { %1845 = vmatprep.subr.bf16.mxu1 %v2356_v5  ;;  %1817 = vmatprep.mubr.msk.bf16.mxu0 %vm2357_vm2, %v2356_v5 }
 0x353   : > { %v1002_v41 = vpop.permute.xlu1 %1001 }
 0x357   : > { %v1116_v42 = vpop.permute.xlu1 %1115 }
 0x358   : > { %v1121_v43 = vsel %vm778_vm4, %v1116_v42, 0  ;;  %1836 = vmatmul.mubr.msk.bf16.vlgmr.msra.gmra.mxu1 %vm778_vm4, %v1002_v41 }
 0x359   : > { %1846 = vmatpush3.bf16.xpose.msra.mxu1 %v1121_v43  ;;  %1847 = vmatprep.mubr.msk.bf16.mxu1 %vm2357_vm2, %v2356_v5 }
 0x35a   : > { %1857 = vmatprep.subr.bf16.mxu1 %v2356_v5 }
 0x35b   : > { %v1114_v44 = vpop.permute.xlu1 %1113 }
 0x360   : > { %1848 = vmatmul.mubr.msk.bf16.vlgmr.msra.gmra.mxu1 %vm778_vm4, %v1114_v44 }
 0x361   : > { %1861 = vmatprep.mubr.msk.bf16.mxu1 %vm2357_vm2, %v2356_v5 }
 0x410   : > { %v819_v45 = vpop.f32.mrf.mxu0  ;;  %v933_v46 = vpop.f32.mrf.mxu1 }
 0x411   : > { %v825_v48 = vmul.f32 0.35355338, %v819_v45  ;;  %v939_v49 = vmul.f32 0.35355338, %v933_v46 }
 0x412   : > { %v1813_v50 = vpop.f32.mrf.mxu0  ;;  %v1825_v51 = vpop.f32.mrf.mxu1 }
 0x413   : > { %v940_v52 = vadd.f32 %v939_v49, %v773_v47  ;;  %v826_v53 = vadd.f32 %v825_v48, %v773_v47 }
 0x414   : > { %v822_v54 = vpop.f32.mrf.mxu0  ;;  %v936_v55 = vpop.f32.mrf.mxu1 }
 0x415   : > { %v941_v56 = vsel %vm778_vm4, %v940_v52, -inf  ;;  %v827_v57 = vsel %vm778_vm4, %v826_v53, -inf }
 0x416   : > { %942 = vmax.xlane.f32.xlu0 %v941_v56  ;;  %v1826_v58 = vpop.f32.mrf.mxu1  ;;  %828 = vmax.xlane.f32.xlu1 %v827_v57  ;;  %v1814_v59 = vpop.f32.mrf.mxu0 }
 0x418   : > { %v1045_v60 = vpop.f32.mrf.mxu1 }
 0x419   : > { %v1051_v61 = vmul.f32 0.35355338, %v1045_v60 }
 0x41a   : > { %v1837_v62 = vpop.f32.mrf.mxu1 }
 0x41b   : > { %v1052_v63 = vadd.f32 %v1051_v61, %v773_v47 }
 0x41c   : > { %v1048_v0 = vpop.f32.mrf.mxu1 }
 0x41d   : > { %v1053_v2 = vsel %vm778_vm4, %v1052_v63, -inf  ;;  %v2047_v0 = vld [vmem:[%s2688_s24 + $0x8] sm:$0xff]  }
 0x41e   : > { %1054 = vmax.xlane.f32.xlu0 %v1053_v2  ;;  %v1838_v3 = vpop.f32.mrf.mxu1  ;;  %1858 = vmatpush3.bf16.msra.mxu1 %v2047_v0  ;;  %v2048_v2 = vld [vmem:[%s2688_s24] sm:$0xff]   ;;  %s2980_s24 = scalar_lea.vmem [#allocation11], %s2666_s30  ;;  %s2983_s30 = sld [smem:[#allocation38_spill]] (!%p1744_p7) }
 0x41f   : > { %1859 = vmatprep.subr.bf16.mxu1 %v2356_v5  ;;  %s2981_s15 = smov %s2980_s24 }
 0x420   : > { %v1157_v4 = vpop.f32.mrf.mxu1 }
 0x421   : > { %v1163_v6 = vmul.f32 0.35355338, %v1157_v4 }
 0x422   : > { %v1849_v7 = vpop.f32.mrf.mxu1  ;;  %1860 = vmatpush3.bf16.msra.mxu1 %v2048_v2 }
 0x423   : > { %v1164_v8 = vadd.f32 %v1163_v6, %v773_v47  ;;  %1873 = vmatprep.subr.bf16.mxu1 %v2356_v5 }
 0x424   : > { %v1160_v9 = vpop.f32.mrf.mxu1 }
 0x425   : > { %v1165_v10 = vsel %vm778_vm4, %v1164_v8, -inf }
 0x426   : > { %v1850_v11 = vpop.f32.mrf.mxu1  ;;  %1166 = vmax.xlane.f32.xlu1 %v1165_v10 }
 0x49f   : > { %v943_v12 = vpop.xlane.xlu0 %942  ;;  %v829_v13 = vpop.xlane.xlu1 %828 }
 0x4a0   : > { %v944_v14 = vsub.f32 %v940_v52, %v943_v12  ;;  %v830_v15 = vsub.f32 %v826_v53, %v829_v13 }
 0x4a2   : > { %v945_v16 = vmul.f32 1.442695, %v944_v14  ;;  %v831_v17 = vmul.f32 1.442695, %v830_v15 }
 0x4a4   : > { %2057 = vpow2.f32 %v945_v16 }
 0x4a5   : > { %2059 = vpow2.f32 %v831_v17 }
 0x4a7   : > { %v1055_v18 = vpop.xlane.xlu0 %1054 }
 0x4a8   : > { %v1056_v19 = vsub.f32 %v1052_v63, %v1055_v18 }
 0x4aa   : > { %v1057_v21 = vmul.f32 1.442695, %v1056_v19 }
 0x4ac   : > { %2061 = vpow2.f32 %v1057_v21 }
 0x4af   : > { %v1167_v28 = vpop.xlane.xlu1 %1166 }
 0x4b0   : > { %v1168_v29 = vsub.f32 %v1164_v8, %v1167_v28  ;;  %v2050_v28 = vld [vmem:[%s2981_s15] sm:$0xff]  }
 0x4b1   : > { %v2058_v22 = vpop.eup %2057 }
 0x4b2   : > { %v2060_v23 = vpop.eup %2059  ;;  %v947_v24 = vsel %vm778_vm4, %v2058_v22, 0.0  ;;  %v1169_v30 = vmul.f32 1.442695, %v1168_v29 }
 0x4b3   : > { %948 = vadd.xlane.f32.xlu1 %v947_v24  ;;  %v833_v25 = vsel %vm778_vm4, %v2060_v23, 0.0 }
 0x4b4   : > { %834 = vadd.xlane.f32.xlu0 %v833_v25  ;;  %2063 = vpow2.f32 %v1169_v30 }
 0x4b9   : > { %v2062_v26 = vpop.eup %2061 }
 0x4ba   : > { %v1059_v27 = vsel %vm778_vm4, %v2062_v26, 0.0 }
 0x4bb   : > { %1060 = vadd.xlane.f32.xlu0 %v1059_v27  ;;  %v2049_v27 = vld [vmem:[%s2980_s24 + $0x8] sm:$0xff]  }
 0x4c1   : > { %v2064_v31 = vpop.eup %2063 }
 0x4c2   : > { %v1171_v32 = vsel %vm778_vm4, %v2064_v31, 0.0 }
 0x4c4   : > { %953 = vrot.lane.b32.xlu1 %v2740_v20, %s2365_s5 }
 0x4d1   : > { %840 = vrot.lane.b32.xlu0 %v2740_v20, %s2366_s8 }
 0x4d5   : > { %1177 = vrot.lane.b32.xlu0 %v2740_v20, %s2367_s28 }
 0x4e8   : > { %1172 = vadd.xlane.f32.xlu1 %v1171_v32  ;;  %v1734_v32 = vld [vmem:[%s598_s2] ss:$0 sm:$0xff] }
 0x4f9   : > { %1065 = vrot.lane.b32.xlu1 %v2740_v20, %s2368_s19 }
 0x53c   : > { %v949_v34 = vpop.xlane.xlu1 %948 }
 0x53d   : > { %v835_v33 = vpop.xlane.xlu0 %834 }
 0x53e   : > { %2065 = vrcp.f32 %v835_v33 }
 0x53f   : > { %2067 = vrcp.f32 %v949_v34 }
 0x540   : > { %v954_v40 = vpop.permute.xlu1 %953 }
 0x541   : > { %v959_v43 = vsel %vm845_vm5, %v954_v40, 0 }
 0x544   : > { %v1061_v35 = vpop.xlane.xlu0 %1060 }
 0x545   : > { %2069 = vrcp.f32 %v1061_v35 }
 0x548   : > { %v841_v36 = vpop.permute.xlu0 %840 }
 0x549   : > { %v847_v37 = vsel %vm845_vm5, %v841_v36, 0  ;;  %v2051_v36 = vld [vmem:[%s2698_s29 + $0x18] sm:$0xff]  }
 0x54a   : > { %1816 = vmatpush3.bf16.msra.mxu0 %v847_v37  ;;  %v2052_v37 = vld [vmem:[%s2698_s29 + $0x10] sm:$0xff]  }
 0x54b   : > { %v2066_v38 = vpop.eup %2065  ;;  %1827 = vmatprep.subr.bf16.mxu0 %v2356_v5 }
 0x54c   : > { %v837_v39 = vmul.f32 %v2066_v38, %v2060_v23  ;;  %v2068_v42 = vpop.eup %2067  ;;  %v1178_v50 = vpop.permute.xlu0 %1177  ;;  %v2053_v38 = vld [vmem:[%s2698_s29 + $0x8] sm:$0xff]  }
 0x54d   : > { %v951_v20 = vmul.f32 %v2068_v42, %v2058_v22  ;;  %v1183_v52 = vsel %vm845_vm5, %v1178_v50, 0 }
 0x54e   : > { %v838_v41 = vpack.c.bf16 %v837_v39, %v837_v39  ;;  %v2054_v39 = vld [vmem:[%s2698_s29] sm:$0xff]  }
 0x54f   : > { %v952_v44 = vpack.c.bf16 %v951_v20, %v951_v20 }
 0x550   : > { %1818 = vmatmul.mubr.msk.bf16.vlgmr.msra.gmra.mxu0 %vm778_vm4, %v838_v41 }
 0x551   : > { %1828 = vmatpush3.bf16.msra.mxu0 %v959_v43  ;;  %1829 = vmatprep.mubr.msk.bf16.mxu0 %vm2357_vm2, %v2356_v5 }
 0x552   : > { %1839 = vmatprep.subr.bf16.mxu0 %v2356_v5  ;;  %v2070_v45 = vpop.eup %2069 }
 0x553   : > { %v1063_v47 = vmul.f32 %v2070_v45, %v2062_v26 }
 0x555   : > { %v1064_v51 = vpack.c.bf16 %v1063_v47, %v1063_v47 }
 0x558   : > { %1830 = vmatmul.mubr.msk.bf16.vlgmr.msra.gmra.mxu0 %vm778_vm4, %v952_v44 }
 0x559   : > { %1841 = vmatprep.mubr.msk.bf16.mxu0 %vm2357_vm2, %v2356_v5 }
 0x571   : > { %v1173_v46 = vpop.xlane.xlu1 %1172 }
 0x572   : > { %2071 = vrcp.f32 %v1173_v46 }
 0x575   : > { %v1066_v48 = vpop.permute.xlu1 %1065 }
 0x576   : > { %v1071_v49 = vsel %vm845_vm5, %v1066_v48, 0 }
 0x577   : > { %1840 = vmatpush3.bf16.msra.mxu0 %v1071_v49 }
 0x578   : > { %1851 = vmatprep.subr.bf16.mxu0 %v2356_v5 }
 0x57a   : > { %1842 = vmatmul.mubr.msk.bf16.vlgmr.msra.gmra.mxu0 %vm778_vm4, %v1064_v51 }
 0x57b   : > { %1852 = vmatpush3.bf16.msra.mxu0 %v1183_v52  ;;  %1853 = vmatprep.mubr.msk.bf16.mxu0 %vm2357_vm2, %v2356_v5 }
 0x57c   : > { %1865 = vmatprep.subr.bf16.mxu0 %v2356_v5 }
 0x57f   : > { %v2072_v53 = vpop.eup %2071 }
 0x580   : > { %v1175_v54 = vmul.f32 %v2072_v53, %v2064_v31 }
 0x582   : > { %v1176_v55 = vpack.c.bf16 %v1175_v54, %v1175_v54 }
 0x584   : > { %1854 = vmatmul.mubr.msk.bf16.vlgmr.msra.gmra.mxu0 %vm778_vm4, %v1176_v55 }
 0x585   : > { %1869 = vmatprep.mubr.msk.bf16.mxu0 %vm2357_vm2, %v2356_v5  ;;  %1866 = vmatpush3.bf16.msra.mxu0 %v2049_v27 }
 0x586   : > { %1867 = vmatprep.subr.bf16.mxu0 %v2356_v5 }
 0x589   : > { %1868 = vmatpush3.bf16.msra.mxu0 %v2050_v28 }
 0x610   : > { %v883_v56 = vpop.f32.mrf.mxu0 }
 0x612   : > { %v1819_v57 = vpop.f32.mrf.mxu0 }
 0x614   : > { %v886_v58 = vpop.f32.mrf.mxu0 }
 0x616   : > { %v1820_v59 = vpop.f32.mrf.mxu0 }
 0x618   : > { %v995_v60 = vpop.f32.mrf.mxu0 }
 0x619   : > { %1226 = vrot.lane.b32.xlu1 %v995_v60, %s2369_s6 }
 0x61a   : > { %v1831_v61 = vpop.f32.mrf.mxu0 }
 0x61c   : > { %v998_v62 = vpop.f32.mrf.mxu0 }
 0x61e   : > { %v1832_v63 = vpop.f32.mrf.mxu0 }
 0x63a   : > { %v1107_v3 = vpop.f32.mrf.mxu0 }
 0x63b   : > { %1230 = vrot.lane.b32.xlu0 %v1107_v3, %s2370_s10 }
 0x63c   : > { %v1843_v4 = vpop.f32.mrf.mxu0 }
 0x63e   : > { %v1110_v6 = vpop.f32.mrf.mxu0 }
 0x640   : > { %v1844_v7 = vpop.f32.mrf.mxu0 }
 0x644   : > { %v1219_v8 = vpop.f32.mrf.mxu0 }
 0x645   : > { %1234 = vrot.lane.b32.xlu1 %v1219_v8, %s2371_s11 }
 0x646   : > { %v1855_v9 = vpop.f32.mrf.mxu0 }
 0x648   : > { %v1222_v10 = vpop.f32.mrf.mxu0 }
 0x64a   : > { %v1856_v11 = vpop.f32.mrf.mxu0 }
 0x68b   : > { %v1227_v12 = vpop.permute.xlu1 %1226 }
 0x68c   : > { %v1237_v14 = vsel %vm778_vm4, %v883_v56, %v1227_v12 }
 0x6ad   : > { %v1231_v13 = vpop.permute.xlu0 %1230 }
 0x6ae   : > { %v1239_v15 = vsel %vm1238_vm6, %v1237_v14, %v1231_v13 }
 0x6b7   : > { %v1235_v16 = vpop.permute.xlu1 %1234 }
 0x6b8   : > { %v1241_v17 = vsel %vm1240_vm7, %v1239_v15, %v1235_v16 }
 0x6b9   : > { %v1242_v18 = vpack.c.bf16 %v1241_v17, %v1241_v17 }
 0x6bb   : > { %1862 = vmatmul.mubr.msk.bf16.vlgmr.msra.gmra.mxu1 %vm614_vm1, %v1242_v18 }
 0x6bc   : > { %1881 = vmatprep.mubr.msk.bf16.mxu1 %vm2357_vm2, %v2356_v5  ;;  %1874 = vmatpush3.bf16.msra.mxu1 %v2051_v36 }
 0x6bd   : > { %1875 = vmatprep.subr.bf16.mxu1 %v2356_v5 }
 0x6c0   : > { %1876 = vmatpush3.bf16.msra.mxu1 %v2052_v37 }
 0x6c1   : > { %1877 = vmatprep.subr.bf16.mxu1 %v2356_v5 }
 0x6c4   : > { %1878 = vmatpush3.bf16.msra.mxu1 %v2053_v38 }
 0x6c5   : > { %1879 = vmatprep.subr.bf16.mxu1 %v2356_v5 }
 0x6c8   : > { %1880 = vmatpush3.bf16.msra.mxu1 %v2054_v39 }
 0x77b   : > { %v1296_v19 = vpop.f32.mrf.mxu1 }
 0x77c   : > { %v1302_v21 = vadd.f32 %v1296_v19, %v2702_v1 }
 0x77d   : > { %v1863_v22 = vpop.f32.mrf.mxu1 }
 0x77e   : > { %v1303_v23 = vmul.f32 %v1302_v21, %v1302_v21 }
 0x77f   : > { %v1299_v24 = vpop.f32.mrf.mxu1 }
 0x780   : > { %v1304_v25 = vsel %vm614_vm1, %v1303_v23, 0.0 }
 0x781   : > { %1305 = vadd.xlane.f32.xlu0 %v1304_v25  ;;  %v1864_v26 = vpop.f32.mrf.mxu1 }
 0x80a   : > { %v1306_v1 = vpop.xlane.xlu0 %1305 }
 0x80b   : > { %v1307_v29 = vmul.f32 0.03125, %v1306_v1 }
 0x80d   : > { %v1308_v30 = vadd.f32 1e-06, %v1307_v29 }
 0x80f   : > { %2073 = vrsqrt.f32 %v1308_v30 }
 0x81c   : > { %v2074_v31 = vpop.eup %2073 }
 0x81d   : > { %v1310_v33 = vmul.f32 %v2074_v31, %v1302_v21 }
 0x81f   : > { %v1318_v34 = vmul.f32 %v1734_v32, %v1310_v33 }
 0x821   : > { %v1319_v35 = vpack.c.bf16 %v1318_v34, %v1318_v34 }
 0x823   : > { %1870 = vmatmul.mubr.msk.bf16.vlgmr.msra.gmra.mxu0 %vm614_vm1, %v1319_v35 }
 0x8e3   : > { %v1373_v40 = vpop.f32.mrf.mxu0 }
 0x8e4   : > { %1387 = vrot.lane.b32.xlu1 %v1373_v40, %s2366_s8  ;;  %v1738_v20 = vmul.f32 -1.442695, %v1373_v40 }
 0x8e5   : > { %v1871_v41 = vpop.f32.mrf.mxu0 }
 0x8e6   : > { %2075 = vpow2.f32 %v1738_v20 }
 0x8e7   : > { %v1376_v42 = vpop.f32.mrf.mxu0 }
 0x8e9   : > { %v1872_v43 = vpop.f32.mrf.mxu0 }
 0x8f3   : > { %v2076_v44 = vpop.eup %2075 }
 0x8f4   : > { %v1382_v45 = vadd.f32 1.0, %v2076_v44 }
 0x8f6   : > { %2077 = vrcp.f32 %v1382_v45 }
 0x903   : > { %v2078_v46 = vpop.eup %2077 }
 0x904   : > { %v1385_v47 = vmul.f32 %v2078_v46, %v1373_v40 }
 0x956   : > { %v1388_v48 = vpop.permute.xlu1 %1387 }
 0x957   : > { %v1390_v49 = vmul.f32 %v1388_v48, %v1385_v47 }
 0x959   : > { %v1391_v50 = vpack.c.bf16 %v1390_v49, %v1390_v49 }
 0x95b   : > { %1882 = vmatmul.mubr.msk.bf16.vlgmr.msra.gmra.mxu1 %vm724_vm3, %v1391_v50 }
 0xa1b   : > { %v1461_v5 = vpop.f32.mrf.mxu1 }
 0xa1c   : > { %v1467_v51 = vadd.f32 %v1461_v5, %v1302_v21 }
 0xa1d   : > { %v1883_v52 = vpop.f32.mrf.mxu1  ;;  %1472 = sbr.rel (%p1744_p7) target bundleno = 2758 (0xac6), region = 96 }
 0xa1e   : > { %1468 = vst.msk [vmem:[#allocation2] sm:$0xff] %vm614_vm1, %v1467_v51 }
 0xa1f   : > { %v1464_v53 = vpop.f32.mrf.mxu1 }
 0xa21   : > { %v1884_v54 = vpop.f32.mrf.mxu1 }
 0xa22   : > { %v1473_v55 = vmul.f32 %v1467_v51, %v1467_v51  ;;  %v1745_v61 = vld [vmem:[%s2983_s30] ss:$0 sm:$0xff] }
 0xa24   : > { %v1474_v56 = vsel %vm614_vm1, %v1473_v55, 0.0 }
 0xa25   : > { %1475 = vadd.xlane.f32.xlu0 %v1474_v56 }
 0xaae   : > { %v1476_v57 = vpop.xlane.xlu0 %1475 }
 0xaaf   : > { %v1477_v58 = vmul.f32 0.03125, %v1476_v57 }
 0xab1   : > { %v1478_v59 = vadd.f32 1e-06, %v1477_v58 }
 0xab3   : > { %2079 = vrsqrt.f32 %v1478_v59 }
 0xac0   : > { %v2080_v60 = vpop.eup %2079 }
 0xac1   : > { %v1480_v62 = vmul.f32 %v2080_v60, %v1467_v51 }
 0xac3   : > { %v1488_v63 = vmul.f32 %v1745_v61, %v1480_v62 }
 0xac5   : > { %1489 = vst.msk [vmem:[%s582_s13] sm:$0xff] %vm614_vm1, %v1488_v63 }
 0xac6 PF: > { %s2984_s27 = sld [smem:[#allocation19_spill]]  ;;  %s1504_s4 = sshll.u32 %s582_s13, 4  ;;  %s1505_s4 = int_to_ptr.vmem [resolvable:$true] %s1504_s4 }
 0xac7   : > { %s2985_s20 = sld [smem:[#allocation39_spill]]  ;;  %s2986_s5 = sand.u32 1, %s2323_s25  }
 0xac8   : > { %s1491_s8 = scalar_lea.sflag [#allocation5], %s2986_s5  ;;  %s2215_s28 = scalar_lea.vmem %s1505_s4, 128 }
 0xac9   : > { %p2216_p3 = scmp.ne.s32.totalorder %s1505_s4, %s2215_s28  ;;  %s2372_s19 = smov [#allocation12]  }
 0xaca   : > { %s2219_s6 = sshll.u32 %s2372_s19, 4  ;;  %s2220_s6 = int_to_ptr.vmem [resolvable:$false] %s2219_s6 }
 0xacb   : > { %p2217_p4 = pnand %p2216_p3, %p2581_p12  ;;  %s2221_s10 = scalar_lea.vmem %s2220_s6, 256 }
 0xacc   : > { %s1747_s16 = sshll.u32 %s2984_s27, 7  ;;  %p2222_p9 = scmp.lt.s32.totalorder %s1505_s4, %s2220_s6 }
 0xacd   : > { %s1502_s0 = scalar_lea.hbm %s2985_s20, %s1747_s16  ;;  %p2218_p6 = pneg %p2217_p4 }
 0xace   : > { %p2223_p5 = scmp.lt.s32.totalorder %s2221_s10, %s2215_s28 }
 0xad0   : > { %p2224_p8 = por %p2223_p5, %p2222_p9 }
 0xad2   : > { %p2225_p11 = pnand %p2224_p8, %p2218_p6 }
 0xad4   : > { %2228 = shalt.err (!%p2225_p11)
}
 0xad5   : > { %s2229_s11 = scalar_lea.hbm %s1502_s0, 128  ;;  %s2233_s24 = scalar_lea.hbm %s2985_s20, 256 }
 0xad6   : > { %p2230_p13 = scmp.ne.s32.totalorder %s1502_s0, %s2229_s11  ;;  %p2234_p2 = scmp.lt.s32.totalorder %s1502_s0, %s2985_s20 }
 0xad7   : > { %p2235_p1 = scmp.lt.s32.totalorder %s2233_s24, %s2229_s11 }
 0xad8   : > { %p2231_p0 = pnand %p2230_p13, %p2581_p12 }
 0xad9   : > { %p2236_p7 = por %p2235_p1, %p2234_p2 }
 0xada   : > { %p2232_p10 = pneg %p2231_p0 }
 0xadc   : > { %p2237_p3 = pnand %p2236_p7, %p2232_p10 }
 0xade   : > { %2240 = shalt.err (!%p2237_p3)
}
 0xadf   : > { %1901 = dma.vmem_to_hbm [thread:$0]  (%p2581_p12), %s1505_s4, 128, %s1502_s0, %s1491_s8  }
 0xae0 PF: > { %s2987_s7 = sld [smem:[#allocation22_spill]]  ;;  %p2989_p6 = scmp.ne.s32.totalorder %s2957_s3, 0 }
 0xae1   : > { %s2988_s18 = sld [smem:[#allocation18_spill]] }
 0xae6   : > { %p1931_p4 = scmp.ge.s32.totalorder %s2987_s7, 2 }
 0xae7   : > { %s1516_s2 = sand.u32 1, %s2988_s18  }
 0xae8   : > { %p1921_p9 = pnand %p1931_p4, %p2989_p6  ;;  %s1517_s29 = scalar_lea.sflag [#allocation5], %s1516_s2 }
 0xaea   : > { %p1922_p5 = pneg %p1921_p9 }
 0xaec   : > { %2302 = dma.done.wait (%p1922_p5), %s1517_s29, 128  }
 0xaed   : > { %2304 = vsyncadd (%p1922_p5), %s1517_s29, 4294967168  ;;  %s30_s13 = sadd.s32 1, %s2987_s7   ;;  %s2990_s30 = sld [smem:[#allocation25_spill]] }
 0xaee   : > { %p27_p8 = scmp.ge.s32.totalorder %s30_s13, 6   ;;  %s2991_s1 = sld [smem:[#allocation26_spill]] }
 0xaef   : > { %s2992_s27 = sld [smem:[#allocation20_spill]]  ;;  %s2996_s21 = smov %s2311_s22 }
 0xaf0   : > { %s2993_s28 = sld [smem:[#allocation21_spill]]  ;;  %s2997_s22 = smov %s2315_s23 }
 0xaf1   : > { %s2994_s29 = sld [smem:[#allocation23_spill]]  ;;  %s2999_s24 = smov %s2323_s25 }
 0xaf2   : > { %s2995_s16 = sld [smem:[#allocation24_spill]]  ;;  %s3000_s25 = smov %s2327_s26 }
 0xaf3   : > { %s2998_s23 = smov %s2990_s30 }
 0xaf4   : > { %s3001_s26 = smov %s2991_s1  ;;  %29 = sbr.rel (!%p27_p8) target bundleno = 25 (0x19), region = 159 }
 0xaf8   : > { %s3002_s30 = smov %s2995_s16 }
 0xaf9   :  { %1522 = vsyncpa [#allocation4], 1 }
 0xafa   :  { %1524 = vsyncpa [#allocation4 + $0x1], 1 }
 0xafb   :  { %1525 = vsyncpa [#allocation7], 1 }
 0xafc   :  { %1526 = vsyncpa [#allocation10], 1 }
 0xafd   :  { %1527 = vsyncpa [#allocation5], 1 }
 0xafe   :  { %1529 = vsyncpa [#allocation5 + $0x1], 1 }

</bundles_post_ra>
